<compile_context>
chip_gen: v7x
topology: tpu7x:2x2x1
jax: 0.10.0
libtpu: 0.0.40
codegen_flags: <defaults>
</compile_context>

<pallas_src>
import functools

import jax
import jax.numpy as jnp
from jax import lax
from jax.experimental import pallas as pl
from jax.experimental.pallas import tpu as pltpu

LN_EPS = 1e-5
NEG_INF = -1e9            # CLIP uses -inf; -1e9 is numerically equivalent here.
MM_DTYPE = jnp.bfloat16   # MXU matmul operand dtype (f32 accumulation everywhere).


# ----------------------------- shared math ---------------------------------

def _layernorm(x, w, b):
    mu = jnp.mean(x, axis=-1, keepdims=True)
    var = jnp.mean((x - mu) ** 2, axis=-1, keepdims=True)
    return (x - mu) * lax.rsqrt(var + LN_EPS) * w + b


# -------------------------------- kernel -----------------------------------

def fused_text_encoder_kernel(
        eot_ref,                                   # scalar prefetch: (B,) int32 in SMEM
        x_ref, pos_ref, causal_ref,                # (Bt,S,D) f32, (S,D) f32, (S,S) f32
        ln1w_ref, ln1b_ref, qkvw_ref, qkvb_ref,    # per-layer blocks (leading dim 1)
        projw_ref, projb_ref, ln2w_ref, ln2b_ref,
        fcw_ref, fcb_ref, fc2w_ref, fc2b_ref,
        lnfw_ref, lnfb_ref, tproj_ref,             # final LN + text projection
        o_ref,                                     # (1, Bt, E) f32
        x_sc,                                      # VMEM scratch (Bt*S, D) f32, layer-resident
        *, heads, quickgelu_bf16):
    # All grid primitives stay at the kernel top level (NOT inside pl.when
    # bodies); their values are captured by the closures below.
    b_tile = pl.program_id(0)
    l = pl.program_id(1)
    n_layers = pl.num_programs(1)

    Bt, S, D = x_ref.shape
    BS = Bt * S
    H = heads
    Dh = D // H
    scale = Dh ** -0.5

    # ---- layer 0: load activation into resident VMEM scratch, add pos emb ----
    @pl.when(l == 0)
    def _():
        x_sc[...] = (x_ref[...] + pos_ref[...][None, :, :]).reshape(BS, D)

    x = x_sc[...]                                               # (BS, D) f32

    # ---- attention branch (batched over Bt*H heads) ----
    xn = _layernorm(x, ln1w_ref[0], ln1b_ref[0])
    qkv = jnp.dot(xn.astype(MM_DTYPE), qkvw_ref[0],
                  preferred_element_type=jnp.float32) + qkvb_ref[0]      # (BS, 3D) f32

    def to_heads(t_f32):   # (BS, D) f32 -> (Bt*H, S, Dh) bf16  (relayout in f32, then cast)
        t = t_f32.reshape(Bt, S, H, Dh).transpose(0, 2, 1, 3)
        return t.reshape(Bt * H, S, Dh).astype(MM_DTYPE)

    q = to_heads(qkv[:, :D] * scale)          # softmax 1/sqrt(Dh) folded into q once
    k = to_heads(qkv[:, D:2 * D])
    v = to_heads(qkv[:, 2 * D:])

    # One batched QK^T and one batched PV matmul (no per-head lane slicing).
    s = lax.dot_general(q, k, (((2,), (2,)), ((0,), (0,))),
                        preferred_element_type=jnp.float32)             # (Bt*H, S, S)
    s = s + causal_ref[...][None, :, :]
    m = jnp.max(s, axis=-1, keepdims=True)
    p = jnp.exp(s - m)
    p = p / jnp.sum(p, axis=-1, keepdims=True)
    o = lax.dot_general(p.astype(MM_DTYPE), v, (((2,), (1,)), ((0,), (0,))),
                        preferred_element_type=jnp.float32)             # (Bt*H, S, Dh)
    attn = o.reshape(Bt, H, S, Dh).transpose(0, 2, 1, 3).reshape(BS, D)
    attn = jnp.dot(attn.astype(MM_DTYPE), projw_ref[0],
                   preferred_element_type=jnp.float32) + projb_ref[0]
    x = x + attn

    # ---- MLP branch ----
    xn2 = _layernorm(x, ln2w_ref[0], ln2b_ref[0])
    h1 = jnp.dot(xn2.astype(MM_DTYPE), fcw_ref[0],
                 preferred_element_type=jnp.float32) + fcb_ref[0]        # (BS, 4D) f32
    if quickgelu_bf16:
        # bf16 QuickGELU: halves VPU/EUP pressure on v6e/v7x; h1 feeds a bf16
        # matmul anyway.  Use quickgelu_bf16=False on v5e (no bf16 VPU/EUP).
        h1b = h1.astype(MM_DTYPE)
        act = h1b * jax.nn.sigmoid(1.702 * h1b)
    else:
        act = (h1 * jax.nn.sigmoid(1.702 * h1)).astype(MM_DTYPE)
    m2 = jnp.dot(act, fc2w_ref[0],
                 preferred_element_type=jnp.float32) + fc2b_ref[0]       # (BS, D)
    x_sc[...] = x + m2

    # ---- last layer: gather EOT rows first, then final LN + text projection ----
    @pl.when(l == n_layers - 1)
    def _():
        rows = []
        for i in range(Bt):
            idx = eot_ref[b_tile * Bt + i]
            rows.append(x_sc[pl.ds(i * S + idx, 1), :])                  # (1, D)
        feats = jnp.concatenate(rows, axis=0)                            # (Bt, D)
        feats = _layernorm(feats, lnfw_ref[...], lnfb_ref[...])
        o_ref[0] = jnp.dot(feats.astype(MM_DTYPE), tproj_ref[...],
                           preferred_element_type=jnp.float32)           # (Bt, E)


# ------------------------------- wrapper ------------------------------------

_STACKED_PARAMS = ("ln1_w", "ln1_b", "qkv_w", "qkv_b", "proj_w", "proj_b",
                   "ln2_w", "ln2_b", "fc_w", "fc_b", "fc2_w", "fc2_b")
_MATMUL_WEIGHTS = ("qkv_w", "proj_w", "fc_w", "fc2_w", "text_projection")


def prepare_params(params):
    """One-time bf16 cast of the matmul weights (do NOT re-cast per forward call)."""
    out = dict(params)
    for name in _MATMUL_WEIGHTS:
        out[name] = params[name].astype(MM_DTYPE)
    return out


def _vmem_limit_bytes():
    try:
        cap = pltpu.get_tpu_info().vmem_capacity_bytes
    except Exception:
        cap = 64 << 20            # assume the smallest per-core VMEM (v7x)
    return int(cap) * 7 // 8      # 56 MiB on v7x, 112 MiB on v5e/v6e


def _pick_block_b(B, S_pad, D, heads, vmem_limit):
    """Size the batch tile from VMEM, preferring >=2 grid steps on the parallel axis."""
    # Rough f32 live-activation footprint per prompt in one layer step
    # (x_sc + xn + qkv + q/k/v + h1(4D) + attn temps) + attention scores.
    per_prompt = S_pad * D * 4 * 12 + heads * S_pad * S_pad * 4
    act_budget = vmem_limit // 3          # leave room for double-buffered weights
    cap = max(1, act_budget // per_prompt)
    divisors = [d for d in range(1, B + 1) if B % d == 0]
    # Keep B//Bt >= 2 so the "parallel" batch axis can be split across v7x's 2 TCs.
    cands = [d for d in divisors if d <= cap and (B // d) >= 2]
    if not cands:
        cands = [d for d in divisors if d <= cap] or [1]
    return max(cands)


def text_encoder_forward(prompts, tokenized_prompts, params, heads,
                         block_b=None, quickgelu_bf16=True):
    B, S, D = prompts.shape
    L = params["qkv_w"].shape[0]
    E = params["text_projection"].shape[1]
    assert D % heads == 0, (D, heads)

    # Pad the context length to a sublane multiple (77 -> 80 for real CLIP) so
    # the (Bt,S,D)<->(BS,D) reshapes are free views.  Padded key columns are
    # masked by the causal mask; padded query rows are never gathered.
    S_pad = (S + 7) // 8 * 8
    if S_pad != S:
        prompts = jnp.pad(prompts, ((0, 0), (0, S_pad - S), (0, 0)))
        pos = jnp.pad(params["pos"], ((0, S_pad - S), (0, 0)))
    else:
        pos = params["pos"]

    vmem_limit = _vmem_limit_bytes()
    if block_b is None:
        block_b = _pick_block_b(B, S_pad, D, heads, vmem_limit)
    Bt = block_b
    assert B % Bt == 0, (B, Bt)

    # EOT index = argmax over token ids (trivial glue outside the kernel).
    eot = jnp.argmax(tokenized_prompts, axis=-1).astype(jnp.int32)

    # Causal mask hoisted out of the per-layer body (replicated input).
    qi = jnp.arange(S_pad, dtype=jnp.int32)[:, None]
    ki = jnp.arange(S_pad, dtype=jnp.int32)[None, :]
    causal = jnp.where(ki > qi, NEG_INF, 0.0).astype(jnp.float32)

    ops = [params[name] for name in _STACKED_PARAMS]

    def rep(shape):                      # constant (replicated) block
        nz = len(shape)
        return pl.BlockSpec(shape, lambda b, l, eot_r, _nz=nz: (0,) * _nz)

    def per_layer(shape):                # indexed by the layer grid axis
        blk = (1,) + tuple(shape[1:])
        nz = len(shape) - 1
        return pl.BlockSpec(blk, lambda b, l, eot_r, _nz=nz: (l,) + (0,) * _nz)

    in_specs = [
        pl.BlockSpec((Bt, S_pad, D), lambda b, l, eot_r: (b, 0, 0)),     # prompts
        rep((S_pad, D)),                                                 # positional embedding
        rep((S_pad, S_pad)),                                             # causal mask
    ]
    in_specs += [per_layer(o.shape) for o in ops]                        # stacked layer params
    in_specs += [rep(params["ln_final_w"].shape),
                 rep(params["ln_final_b"].shape),
                 rep(params["text_projection"].shape)]

    # NOTE: correctness of the resident x_sc scratch requires the layer axis to
    # stay the innermost, sequentially executed ("arbitrary") grid axis with the
    # batch-tile axis outer/"parallel".  Do not reorder the grid.
    grid = (B // Bt, L)

    # Advisory cost hint so XLA schedules surrounding ops around the kernel.
    tokens = B * S_pad
    gemm_flops = 2 * tokens * L * 12 * D * D + 2 * B * D * E
    attn_flops = 4 * B * L * S_pad * S_pad * D
    weight_bytes = L * (2 * 12 * D * D) * (B // Bt)
    cost = pl.CostEstimate(
        flops=int(gemm_flops + attn_flops),
        transcendentals=int(B * L * (heads * S_pad * S_pad + 4 * S_pad * D)),
        bytes_accessed=int(weight_bytes + tokens * D * 4 + B * E * 4))

    grid_spec = pltpu.PrefetchScalarGridSpec(
        num_scalar_prefetch=1,
        grid=grid,
        in_specs=in_specs,
        # Output kept 3-D (B//Bt, Bt, E) so the block's trailing dims equal the
        # full array dims (valid for any Bt); reshaped to (B, E) below.
        out_specs=pl.BlockSpec((1, Bt, E), lambda b, l, eot_r: (b, 0, 0)),
        scratch_shapes=[pltpu.VMEM((Bt * S_pad, D), jnp.float32)],      # resident activation
    )

    out = pl.pallas_call(
        functools.partial(fused_text_encoder_kernel, heads=heads,
                          quickgelu_bf16=quickgelu_bf16),
        out_shape=jax.ShapeDtypeStruct((B // Bt, Bt, E), jnp.float32),
        grid_spec=grid_spec,
        compiler_params=pltpu.CompilerParams(
            dimension_semantics=("parallel", "arbitrary"),
            vmem_limit_bytes=vmem_limit),
        cost_estimate=cost,
    )(eot, prompts, pos, causal, *ops,
      params["ln_final_w"], params["ln_final_b"], params["text_projection"])
    return out.reshape(B, E)


# ------------------------- parameter initialization -------------------------

def init_params(key, *, width, layers, embed_dim, ctx_len):
    keys = iter(jax.random.split(key, 8))
    norm = lambda shape, std: (std * jax.random.normal(next(keys), shape)).astype(jnp.float32)
    D = width
    return {
        "pos": norm((ctx_len, D), 0.01),
        "ln_final_w": jnp.ones((1, D), jnp.float32),
        "ln_final_b": jnp.zeros((1, D), jnp.float32),
        "text_projection": norm((D, embed_dim), D ** -0.5),
        # per-layer params stacked on a leading L axis; matmul weights in (in, out)
        # layout (i.e. PyTorch weight.T).
        "ln1_w": jnp.ones((layers, 1, D), jnp.float32),
        "ln1_b": jnp.zeros((layers, 1, D), jnp.float32),
        "qkv_w": norm((layers, D, 3 * D), D ** -0.5),
        "qkv_b": jnp.zeros((layers, 1, 3 * D), jnp.float32),
        "proj_w": norm((layers, D, D), D ** -0.5),
        "proj_b": jnp.zeros((layers, 1, D), jnp.float32),
        "ln2_w": jnp.ones((layers, 1, D), jnp.float32),
        "ln2_b": jnp.zeros((layers, 1, D), jnp.float32),
        "fc_w": norm((layers, D, 4 * D), D ** -0.5),
        "fc_b": jnp.zeros((layers, 1, 4 * D), jnp.float32),
        "fc2_w": norm((layers, 4 * D, D), (2 * D) ** -0.5),
        "fc2_b": jnp.zeros((layers, 1, D), jnp.float32),
    }


# ------------------------- pure-JAX reference (check) -----------------------

def reference_forward(prompts, tokenized_prompts, params, heads):
    x = prompts + params["pos"]
    B, S, D = x.shape
    Dh = D // heads
    L = params["qkv_w"].shape[0]
    mask = jnp.where(jnp.arange(S)[None, :] > jnp.arange(S)[:, None], NEG_INF, 0.0)
    for l in range(L):
        xn = _layernorm(x, params["ln1_w"][l], params["ln1_b"][l])
        qkv = xn @ params["qkv_w"][l] + params["qkv_b"][l]
        q, k, v = jnp.split(qkv, 3, axis=-1)
        q = q.reshape(B, S, heads, Dh)
        k = k.reshape(B, S, heads, Dh)
        v = v.reshape(B, S, heads, Dh)
        s = jnp.einsum("bqhd,bkhd->bhqk", q, k) * (Dh ** -0.5) + mask
        a = jax.nn.softmax(s, axis=-1)
        o = jnp.einsum("bhqk,bkhd->bqhd", a, v).reshape(B, S, D)
        x = x + o @ params["proj_w"][l] + params["proj_b"][l]
        xn2 = _layernorm(x, params["ln2_w"][l], params["ln2_b"][l])
        h1 = xn2 @ params["fc_w"][l] + params["fc_b"][l]
        h1 = h1 * jax.nn.sigmoid(1.702 * h1)
        x = x + h1 @ params["fc2_w"][l] + params["fc2_b"][l]
    xn = _layernorm(x, params["ln_final_w"], params["ln_final_b"])
    eot = jnp.argmax(tokenized_prompts, axis=-1)
    return xn[jnp.arange(B), eot] @ params["text_projection"]


# ----------------------------------- main ------------------------------------

if __name__ == "__main__":
    # Small but tile-friendly shapes: D=128 (full lane), Dh=32, S=7 (exercises
    # the pad-to-8 path), B=4 (batch tiling + parallel grid axis exercised).
    B, S, D, H, L, E = 4, 7, 128, 4, 2, 64

    key = jax.random.PRNGKey(0)
    k_prm, k_in, k_tok = jax.random.split(key, 3)
    params = init_params(k_prm, width=D, layers=L, embed_dim=E, ctx_len=S)
    kparams = prepare_params(params)      # one-time bf16 cast of matmul weights

    prompts = jax.random.normal(k_in, (B, S, D), dtype=jnp.float32)
    tokenized_prompts = jax.random.randint(k_tok, (B, S), 0, 1000, dtype=jnp.int32)

    out = text_encoder_forward(prompts, tokenized_prompts, kparams, heads=H)
    out = jax.block_until_ready(out)

    ref = jax.block_until_ready(reference_forward(prompts, tokenized_prompts, params, heads=H))
    assert out.shape == (B, E), out.shape
    max_diff = float(jnp.max(jnp.abs(out - ref)))
    # bf16 MXU matmuls + bf16 QuickGELU vs pure-f32 reference -> loose tolerance.
    assert jnp.allclose(out, ref, atol=7.5e-2, rtol=7.5e-2), max_diff

    print("KERNEL_OK")
</pallas_src>

<mosaic_0001>
module attributes {stable_mosaic.version = 11 : i64} {
  func.func @fused_text_encoder_kernel(%arg0: i32, %arg1: i32, %arg2: memref<4xi32, #tpu.memory_space<smem>>, %arg3: memref<2x8x128xf32, #tpu.memory_space<vmem>>, %arg4: memref<8x128xf32, #tpu.memory_space<vmem>>, %arg5: memref<8x8xf32, #tpu.memory_space<vmem>>, %arg6: memref<1x1x128xf32, #tpu.memory_space<vmem>>, %arg7: memref<1x1x128xf32, #tpu.memory_space<vmem>>, %arg8: memref<1x128x384xbf16, #tpu.memory_space<vmem>>, %arg9: memref<1x1x384xf32, #tpu.memory_space<vmem>>, %arg10: memref<1x128x128xbf16, #tpu.memory_space<vmem>>, %arg11: memref<1x1x128xf32, #tpu.memory_space<vmem>>, %arg12: memref<1x1x128xf32, #tpu.memory_space<vmem>>, %arg13: memref<1x1x128xf32, #tpu.memory_space<vmem>>, %arg14: memref<1x128x512xbf16, #tpu.memory_space<vmem>>, %arg15: memref<1x1x512xf32, #tpu.memory_space<vmem>>, %arg16: memref<1x512x128xbf16, #tpu.memory_space<vmem>>, %arg17: memref<1x1x128xf32, #tpu.memory_space<vmem>>, %arg18: memref<1x128xf32, #tpu.memory_space<vmem>>, %arg19: memref<1x128xf32, #tpu.memory_space<vmem>>, %arg20: memref<128x64xbf16, #tpu.memory_space<vmem>>, %arg21: memref<1x2x64xf32, #tpu.memory_space<vmem>>, %arg22: memref<16x128xf32, #tpu.memory_space<vmem>>) attributes {dimension_semantics = [#tpu.dimension_semantics<parallel>, #tpu.dimension_semantics<arbitrary>], iteration_bounds = array<i64: 2, 2>, scalar_prefetch = 1 : i64, scratch_operands = 1 : i64, tpu.core_type = #tpu.core_type<tc>, window_params = [{transform_indices = @transform_0, window_bounds = array<i64: 2, 8, 128>}, {pipeline_mode = #tpu.pipeline_mode<synchronous>, transform_indices = @transform_1, window_bounds = array<i64: 8, 128>}, {pipeline_mode = #tpu.pipeline_mode<synchronous>, transform_indices = @transform_2, window_bounds = array<i64: 8, 8>}, {transform_indices = @transform_3, window_bounds = array<i64: 1, 1, 128>}, {transform_indices = @transform_4, window_bounds = array<i64: 1, 1, 128>}, {transform_indices = @transform_5, window_bounds = array<i64: 1, 128, 384>}, {transform_indices = @transform_6, window_bounds = array<i64: 1, 1, 384>}, {transform_indices = @transform_7, window_bounds = array<i64: 1, 128, 128>}, {transform_indices = @transform_8, window_bounds = array<i64: 1, 1, 128>}, {transform_indices = @transform_9, window_bounds = array<i64: 1, 1, 128>}, {transform_indices = @transform_10, window_bounds = array<i64: 1, 1, 128>}, {transform_indices = @transform_11, window_bounds = array<i64: 1, 128, 512>}, {transform_indices = @transform_12, window_bounds = array<i64: 1, 1, 512>}, {transform_indices = @transform_13, window_bounds = array<i64: 1, 512, 128>}, {transform_indices = @transform_14, window_bounds = array<i64: 1, 1, 128>}, {pipeline_mode = #tpu.pipeline_mode<synchronous>, transform_indices = @transform_15, window_bounds = array<i64: 1, 128>}, {pipeline_mode = #tpu.pipeline_mode<synchronous>, transform_indices = @transform_16, window_bounds = array<i64: 1, 128>}, {pipeline_mode = #tpu.pipeline_mode<synchronous>, transform_indices = @transform_17, window_bounds = array<i64: 128, 64>}, {transform_indices = @transform_18, window_bounds = array<i64: 1, 2, 64>}]} {
    %c0_i32 = arith.constant 0 : i32
    %0 = arith.cmpi eq, %arg1, %c0_i32 : i32
    %1 = arith.extui %0 : i1 to i32
    %c0_i32_0 = arith.constant 0 : i32
    %2 = arith.cmpi ne, %1, %c0_i32_0 : i32
    scf.if %2 {
      %c0_63 = arith.constant 0 : index
      %c0_64 = arith.constant 0 : index
      %c0_65 = arith.constant 0 : index
      %138 = vector.load %arg3[%c0_63, %c0_64, %c0_65] : memref<2x8x128xf32, #tpu.memory_space<vmem>>, vector<2x8x128xf32>
      %c0_66 = arith.constant 0 : index
      %c0_67 = arith.constant 0 : index
      %139 = vector.load %arg4[%c0_66, %c0_67] : memref<8x128xf32, #tpu.memory_space<vmem>>, vector<8x128xf32>
      %140 = vector.shape_cast %139 : vector<8x128xf32> to vector<1x8x128xf32>
      %141 = vector.broadcast %140 : vector<1x8x128xf32> to vector<2x8x128xf32>
      %142 = arith.addf %138, %141 : vector<2x8x128xf32>
      %143 = vector.shape_cast %142 : vector<2x8x128xf32> to vector<16x128xf32>
      %c0_68 = arith.constant 0 : index
      %c0_69 = arith.constant 0 : index
      %144 = vector.load %arg22[%c0_68, %c0_69] : memref<16x128xf32, #tpu.memory_space<vmem>>, vector<16x128xf32>
      tpu.vector_store %arg22[%c0_68, %c0_69], %143 {strides = array<i32>} : memref<16x128xf32, #tpu.memory_space<vmem>>, vector<16x128xf32>,
    } else {
    }
    %c0 = arith.constant 0 : index
    %c0_1 = arith.constant 0 : index
    %3 = vector.load %arg22[%c0, %c0_1] : memref<16x128xf32, #tpu.memory_space<vmem>>, vector<16x128xf32>
    %c0_2 = arith.constant 0 : index
    %c0_3 = arith.constant 0 : index
    %c0_4 = arith.constant 0 : index
    %4 = vector.load %arg6[%c0_2, %c0_3, %c0_4] : memref<1x1x128xf32, #tpu.memory_space<vmem>>, vector<1x1x128xf32>
    %5 = vector.shape_cast %4 : vector<1x1x128xf32> to vector<1x128xf32>
    %c0_5 = arith.constant 0 : index
    %c0_6 = arith.constant 0 : index
    %c0_7 = arith.constant 0 : index
    %6 = vector.load %arg7[%c0_5, %c0_6, %c0_7] : memref<1x1x128xf32, #tpu.memory_space<vmem>>, vector<1x1x128xf32>
    %7 = vector.shape_cast %6 : vector<1x1x128xf32> to vector<1x128xf32>
    %cst = arith.constant dense<0.000000e+00> : vector<16xf32>
    %8 = vector.multi_reduction <add>, %3, %cst [1] : vector<16x128xf32> to vector<16xf32>
    %9 = vector.shape_cast %8 : vector<16xf32> to vector<16x1xf32>
    %cst_8 = arith.constant 1.280000e+02 : f32
    %10 = vector.broadcast %cst_8 : f32 to vector<16x1xf32>
    %11 = arith.divf %9, %10 : vector<16x1xf32>
    %12 = vector.broadcast %11 : vector<16x1xf32> to vector<16x128xf32>
    %13 = arith.subf %3, %12 : vector<16x128xf32>
    %14 = arith.mulf %13, %13 : vector<16x128xf32>
    %cst_9 = arith.constant dense<0.000000e+00> : vector<16xf32>
    %15 = vector.multi_reduction <add>, %14, %cst_9 [1] : vector<16x128xf32> to vector<16xf32>
    %16 = vector.shape_cast %15 : vector<16xf32> to vector<16x1xf32>
    %cst_10 = arith.constant 1.280000e+02 : f32
    %17 = vector.broadcast %cst_10 : f32 to vector<16x1xf32>
    %18 = arith.divf %16, %17 : vector<16x1xf32>
    %19 = vector.broadcast %11 : vector<16x1xf32> to vector<16x128xf32>
    %20 = arith.subf %3, %19 : vector<16x128xf32>
    %cst_11 = arith.constant 9.99999974E-6 : f32
    %21 = vector.broadcast %cst_11 : f32 to vector<16x1xf32>
    %22 = arith.addf %18, %21 : vector<16x1xf32>
    %23 = math.rsqrt %22 : vector<16x1xf32>
    %24 = vector.broadcast %23 : vector<16x1xf32> to vector<16x128xf32>
    %25 = arith.mulf %20, %24 : vector<16x128xf32>
    %26 = vector.broadcast %5 : vector<1x128xf32> to vector<16x128xf32>
    %27 = arith.mulf %25, %26 : vector<16x128xf32>
    %28 = vector.broadcast %7 : vector<1x128xf32> to vector<16x128xf32>
    %29 = arith.addf %27, %28 : vector<16x128xf32>
    %30 = arith.truncf %29 : vector<16x128xf32> to vector<16x128xbf16>
    %c0_12 = arith.constant 0 : index
    %c0_13 = arith.constant 0 : index
    %c0_14 = arith.constant 0 : index
    %31 = vector.load %arg8[%c0_12, %c0_13, %c0_14] : memref<1x128x384xbf16, #tpu.memory_space<vmem>>, vector<1x128x384xbf16>
    %32 = vector.shape_cast %31 : vector<1x128x384xbf16> to vector<128x384xbf16>
    %cst_15 = arith.constant dense<0.000000e+00> : vector<16x384xf32>
    %33 = tpu.matmul %30, %32, %cst_15 {dimension_numbers = #tpu.dot_dimension_numbers<[1], [0], [0], [1], [0, 0, 1, 1], [], []>} : vector<16x128xbf16>, vector<128x384xbf16>, vector<16x384xf32> -> vector<16x384xf32>
    %c0_16 = arith.constant 0 : index
    %c0_17 = arith.constant 0 : index
    %c0_18 = arith.constant 0 : index
    %34 = vector.load %arg9[%c0_16, %c0_17, %c0_18] : memref<1x1x384xf32, #tpu.memory_space<vmem>>, vector<1x1x384xf32>
    %35 = vector.shape_cast %34 : vector<1x1x384xf32> to vector<1x384xf32>
    %36 = vector.broadcast %35 : vector<1x384xf32> to vector<16x384xf32>
    %37 = arith.addf %33, %36 : vector<16x384xf32>
    %38 = vector.extract_strided_slice %37 {offsets = [0, 0], sizes = [16, 128], strides = [1, 1]} : vector<16x384xf32> to vector<16x128xf32>
    %cst_19 = arith.constant 0.176776692 : f32
    %39 = vector.broadcast %cst_19 : f32 to vector<16x128xf32>
    %40 = arith.mulf %38, %39 : vector<16x128xf32>
    %41 = vector.shape_cast %40 : vector<16x128xf32> to vector<2x8x4x32xf32>
    %42 = tpu.transpose %41, [0, 2, 1, 3] : vector<2x8x4x32xf32> -> vector<2x4x8x32xf32>
    %43 = vector.shape_cast %42 : vector<2x4x8x32xf32> to vector<8x8x32xf32>
    %44 = arith.truncf %43 : vector<8x8x32xf32> to vector<8x8x32xbf16>
    %45 = vector.extract_strided_slice %37 {offsets = [0, 128], sizes = [16, 128], strides = [1, 1]} : vector<16x384xf32> to vector<16x128xf32>
    %46 = vector.shape_cast %45 : vector<16x128xf32> to vector<2x8x4x32xf32>
    %47 = tpu.transpose %46, [0, 2, 1, 3] : vector<2x8x4x32xf32> -> vector<2x4x8x32xf32>
    %48 = vector.shape_cast %47 : vector<2x4x8x32xf32> to vector<8x8x32xf32>
    %49 = arith.truncf %48 : vector<8x8x32xf32> to vector<8x8x32xbf16>
    %50 = vector.extract_strided_slice %37 {offsets = [0, 256], sizes = [16, 128], strides = [1, 1]} : vector<16x384xf32> to vector<16x128xf32>
    %51 = vector.shape_cast %50 : vector<16x128xf32> to vector<2x8x4x32xf32>
    %52 = tpu.transpose %51, [0, 2, 1, 3] : vector<2x8x4x32xf32> -> vector<2x4x8x32xf32>
    %53 = vector.shape_cast %52 : vector<2x4x8x32xf32> to vector<8x8x32xf32>
    %54 = arith.truncf %53 : vector<8x8x32xf32> to vector<8x8x32xbf16>
    %cst_20 = arith.constant dense<0.000000e+00> : vector<8x8x8xf32>
    %55 = tpu.matmul %44, %49, %cst_20 {dimension_numbers = #tpu.dot_dimension_numbers<[2], [2], [1], [1], [0, 0, 0, 1, 1, 1], [0], [0]>} : vector<8x8x32xbf16>, vector<8x8x32xbf16>, vector<8x8x8xf32> -> vector<8x8x8xf32>
    %c0_21 = arith.constant 0 : index
    %c0_22 = arith.constant 0 : index
    %56 = vector.load %arg5[%c0_21, %c0_22] : memref<8x8xf32, #tpu.memory_space<vmem>>, vector<8x8xf32>
    %57 = vector.shape_cast %56 : vector<8x8xf32> to vector<1x8x8xf32>
    %58 = vector.broadcast %57 : vector<1x8x8xf32> to vector<8x8x8xf32>
    %59 = arith.addf %55, %58 : vector<8x8x8xf32>
    %cst_23 = arith.constant dense<0xFF800000> : vector<8x8xf32>
    %60 = vector.multi_reduction <maximumf>, %59, %cst_23 [2] : vector<8x8x8xf32> to vector<8x8xf32>
    %61 = vector.shape_cast %60 : vector<8x8xf32> to vector<8x8x1xf32>
    %62 = vector.broadcast %61 : vector<8x8x1xf32> to vector<8x8x8xf32>
    %63 = arith.subf %59, %62 : vector<8x8x8xf32>
    %64 = math.exp %63 : vector<8x8x8xf32>
    %cst_24 = arith.constant dense<0.000000e+00> : vector<8x8xf32>
    %65 = vector.multi_reduction <add>, %64, %cst_24 [2] : vector<8x8x8xf32> to vector<8x8xf32>
    %66 = vector.shape_cast %65 : vector<8x8xf32> to vector<8x8x1xf32>
    %67 = vector.broadcast %66 : vector<8x8x1xf32> to vector<8x8x8xf32>
    %68 = arith.divf %64, %67 : vector<8x8x8xf32>
    %69 = arith.truncf %68 : vector<8x8x8xf32> to vector<8x8x8xbf16>
    %cst_25 = arith.constant dense<0.000000e+00> : vector<8x8x32xf32>
    %70 = tpu.matmul %69, %54, %cst_25 {dimension_numbers = #tpu.dot_dimension_numbers<[2], [1], [1], [2], [0, 0, 0, 1, 1, 2], [0], [0]>} : vector<8x8x8xbf16>, vector<8x8x32xbf16>, vector<8x8x32xf32> -> vector<8x8x32xf32>
    %71 = vector.shape_cast %70 : vector<8x8x32xf32> to vector<2x4x8x32xf32>
    %72 = tpu.transpose %71, [0, 2, 1, 3] : vector<2x4x8x32xf32> -> vector<2x8x4x32xf32>
    %73 = vector.shape_cast %72 : vector<2x8x4x32xf32> to vector<16x128xf32>
    %74 = arith.truncf %73 : vector<16x128xf32> to vector<16x128xbf16>
    %c0_26 = arith.constant 0 : index
    %c0_27 = arith.constant 0 : index
    %c0_28 = arith.constant 0 : index
    %75 = vector.load %arg10[%c0_26, %c0_27, %c0_28] : memref<1x128x128xbf16, #tpu.memory_space<vmem>>, vector<1x128x128xbf16>
    %76 = vector.shape_cast %75 : vector<1x128x128xbf16> to vector<128x128xbf16>
    %cst_29 = arith.constant dense<0.000000e+00> : vector<16x128xf32>
    %77 = tpu.matmul %74, %76, %cst_29 {dimension_numbers = #tpu.dot_dimension_numbers<[1], [0], [0], [1], [0, 0, 1, 1], [], []>} : vector<16x128xbf16>, vector<128x128xbf16>, vector<16x128xf32> -> vector<16x128xf32>
    %c0_30 = arith.constant 0 : index
    %c0_31 = arith.constant 0 : index
    %c0_32 = arith.constant 0 : index
    %78 = vector.load %arg11[%c0_30, %c0_31, %c0_32] : memref<1x1x128xf32, #tpu.memory_space<vmem>>, vector<1x1x128xf32>
    %79 = vector.shape_cast %78 : vector<1x1x128xf32> to vector<1x128xf32>
    %80 = vector.broadcast %79 : vector<1x128xf32> to vector<16x128xf32>
    %81 = arith.addf %77, %80 : vector<16x128xf32>
    %82 = arith.addf %3, %81 : vector<16x128xf32>
    %c0_33 = arith.constant 0 : index
    %c0_34 = arith.constant 0 : index
    %c0_35 = arith.constant 0 : index
    %83 = vector.load %arg12[%c0_33, %c0_34, %c0_35] : memref<1x1x128xf32, #tpu.memory_space<vmem>>, vector<1x1x128xf32>
    %84 = vector.shape_cast %83 : vector<1x1x128xf32> to vector<1x128xf32>
    %c0_36 = arith.constant 0 : index
    %c0_37 = arith.constant 0 : index
    %c0_38 = arith.constant 0 : index
    %85 = vector.load %arg13[%c0_36, %c0_37, %c0_38] : memref<1x1x128xf32, #tpu.memory_space<vmem>>, vector<1x1x128xf32>
    %86 = vector.shape_cast %85 : vector<1x1x128xf32> to vector<1x128xf32>
    %cst_39 = arith.constant dense<0.000000e+00> : vector<16xf32>
    %87 = vector.multi_reduction <add>, %82, %cst_39 [1] : vector<16x128xf32> to vector<16xf32>
    %88 = vector.shape_cast %87 : vector<16xf32> to vector<16x1xf32>
    %cst_40 = arith.constant 1.280000e+02 : f32
    %89 = vector.broadcast %cst_40 : f32 to vector<16x1xf32>
    %90 = arith.divf %88, %89 : vector<16x1xf32>
    %91 = vector.broadcast %90 : vector<16x1xf32> to vector<16x128xf32>
    %92 = arith.subf %82, %91 : vector<16x128xf32>
    %93 = arith.mulf %92, %92 : vector<16x128xf32>
    %cst_41 = arith.constant dense<0.000000e+00> : vector<16xf32>
    %94 = vector.multi_reduction <add>, %93, %cst_41 [1] : vector<16x128xf32> to vector<16xf32>
    %95 = vector.shape_cast %94 : vector<16xf32> to vector<16x1xf32>
    %cst_42 = arith.constant 1.280000e+02 : f32
    %96 = vector.broadcast %cst_42 : f32 to vector<16x1xf32>
    %97 = arith.divf %95, %96 : vector<16x1xf32>
    %98 = vector.broadcast %90 : vector<16x1xf32> to vector<16x128xf32>
    %99 = arith.subf %82, %98 : vector<16x128xf32>
    %cst_43 = arith.constant 9.99999974E-6 : f32
    %100 = vector.broadcast %cst_43 : f32 to vector<16x1xf32>
    %101 = arith.addf %97, %100 : vector<16x1xf32>
    %102 = math.rsqrt %101 : vector<16x1xf32>
    %103 = vector.broadcast %102 : vector<16x1xf32> to vector<16x128xf32>
    %104 = arith.mulf %99, %103 : vector<16x128xf32>
    %105 = vector.broadcast %84 : vector<1x128xf32> to vector<16x128xf32>
    %106 = arith.mulf %104, %105 : vector<16x128xf32>
    %107 = vector.broadcast %86 : vector<1x128xf32> to vector<16x128xf32>
    %108 = arith.addf %106, %107 : vector<16x128xf32>
    %109 = arith.truncf %108 : vector<16x128xf32> to vector<16x128xbf16>
    %c0_44 = arith.constant 0 : index
    %c0_45 = arith.constant 0 : index
    %c0_46 = arith.constant 0 : index
    %110 = vector.load %arg14[%c0_44, %c0_45, %c0_46] : memref<1x128x512xbf16, #tpu.memory_space<vmem>>, vector<1x128x512xbf16>
    %111 = vector.shape_cast %110 : vector<1x128x512xbf16> to vector<128x512xbf16>
    %cst_47 = arith.constant dense<0.000000e+00> : vector<16x512xf32>
    %112 = tpu.matmul %109, %111, %cst_47 {dimension_numbers = #tpu.dot_dimension_numbers<[1], [0], [0], [1], [0, 0, 1, 1], [], []>} : vector<16x128xbf16>, vector<128x512xbf16>, vector<16x512xf32> -> vector<16x512xf32>
    %c0_48 = arith.constant 0 : index
    %c0_49 = arith.constant 0 : index
    %c0_50 = arith.constant 0 : index
    %113 = vector.load %arg15[%c0_48, %c0_49, %c0_50] : memref<1x1x512xf32, #tpu.memory_space<vmem>>, vector<1x1x512xf32>
    %114 = vector.shape_cast %113 : vector<1x1x512xf32> to vector<1x512xf32>
    %115 = vector.broadcast %114 : vector<1x512xf32> to vector<16x512xf32>
    %116 = arith.addf %112, %115 : vector<16x512xf32>
    %117 = arith.truncf %116 : vector<16x512xf32> to vector<16x512xbf16>
    %cst_51 = arith.constant 1.703130e+00 : bf16
    %118 = vector.broadcast %cst_51 : bf16 to vector<16x512xbf16>
    %119 = arith.mulf %118, %117 : vector<16x512xbf16>
    %120 = arith.negf %119 : vector<16x512xbf16>
    %121 = math.exp %120 : vector<16x512xbf16>
    %cst_52 = arith.constant 1.000000e+00 : bf16
    %122 = vector.broadcast %cst_52 : bf16 to vector<16x512xbf16>
    %123 = arith.addf %122, %121 : vector<16x512xbf16>
    %124 = arith.divf %122, %123 : vector<16x512xbf16>
    %125 = arith.mulf %117, %124 : vector<16x512xbf16>
    %c0_53 = arith.constant 0 : index
    %c0_54 = arith.constant 0 : index
    %c0_55 = arith.constant 0 : index
    %126 = vector.load %arg16[%c0_53, %c0_54, %c0_55] : memref<1x512x128xbf16, #tpu.memory_space<vmem>>, vector<1x512x128xbf16>
    %127 = vector.shape_cast %126 : vector<1x512x128xbf16> to vector<512x128xbf16>
    %cst_56 = arith.constant dense<0.000000e+00> : vector<16x128xf32>
    %128 = tpu.matmul %125, %127, %cst_56 {dimension_numbers = #tpu.dot_dimension_numbers<[1], [0], [0], [1], [0, 0, 1, 1], [], []>} : vector<16x512xbf16>, vector<512x128xbf16>, vector<16x128xf32> -> vector<16x128xf32>
    %c0_57 = arith.constant 0 : index
    %c0_58 = arith.constant 0 : index
    %c0_59 = arith.constant 0 : index
    %129 = vector.load %arg17[%c0_57, %c0_58, %c0_59] : memref<1x1x128xf32, #tpu.memory_space<vmem>>, vector<1x1x128xf32>
    %130 = vector.shape_cast %129 : vector<1x1x128xf32> to vector<1x128xf32>
    %131 = vector.broadcast %130 : vector<1x128xf32> to vector<16x128xf32>
    %132 = arith.addf %128, %131 : vector<16x128xf32>
    %133 = arith.addf %82, %132 : vector<16x128xf32>
    %c0_60 = arith.constant 0 : index
    %c0_61 = arith.constant 0 : index
    %134 = vector.load %arg22[%c0_60, %c0_61] : memref<16x128xf32, #tpu.memory_space<vmem>>, vector<16x128xf32>
    tpu.vector_store %arg22[%c0_60, %c0_61], %133 {strides = array<i32>} : memref<16x128xf32, #tpu.memory_space<vmem>>, vector<16x128xf32>,
    %c1_i32 = arith.constant 1 : i32
    %135 = arith.cmpi eq, %arg1, %c1_i32 : i32
    %136 = arith.extui %135 : i1 to i32
    %c0_i32_62 = arith.constant 0 : i32
    %137 = arith.cmpi ne, %136, %c0_i32_62 : i32
    scf.if %137 {
      %c2_i32 = arith.constant 2 : i32
      %138 = arith.muli %arg0, %c2_i32 : i32
      %c0_i32_63 = arith.constant 0 : i32
      %139 = arith.addi %138, %c0_i32_63 : i32
      %140 = arith.index_cast %139 : i32 to index
      %141 = memref.load %arg2[%140] : memref<4xi32, #tpu.memory_space<smem>>
      %c0_i32_64 = arith.constant 0 : i32
      %142 = arith.addi %c0_i32_64, %141 : i32
      %143 = arith.index_cast %142 : i32 to index
      %c0_65 = arith.constant 0 : index
      %144 = vector.load %arg22[%143, %c0_65] : memref<16x128xf32, #tpu.memory_space<vmem>>, vector<1x128xf32>
      %c2_i32_66 = arith.constant 2 : i32
      %145 = arith.muli %arg0, %c2_i32_66 : i32
      %c1_i32_67 = arith.constant 1 : i32
      %146 = arith.addi %145, %c1_i32_67 : i32
      %147 = arith.index_cast %146 : i32 to index
      %148 = memref.load %arg2[%147] : memref<4xi32, #tpu.memory_space<smem>>
      %c8_i32 = arith.constant 8 : i32
      %149 = arith.addi %c8_i32, %148 : i32
      %150 = arith.index_cast %149 : i32 to index
      %c0_68 = arith.constant 0 : index
      %151 = vector.load %arg22[%150, %c0_68] : memref<16x128xf32, #tpu.memory_space<vmem>>, vector<1x128xf32>
      %152 = tpu.concatenate %144, %151 in 0 : vector<1x128xf32>, vector<1x128xf32> -> vector<2x128xf32>
      %c0_69 = arith.constant 0 : index
      %c0_70 = arith.constant 0 : index
      %153 = vector.load %arg18[%c0_69, %c0_70] : memref<1x128xf32, #tpu.memory_space<vmem>>, vector<1x128xf32>
      %c0_71 = arith.constant 0 : index
      %c0_72 = arith.constant 0 : index
      %154 = vector.load %arg19[%c0_71, %c0_72] : memref<1x128xf32, #tpu.memory_space<vmem>>, vector<1x128xf32>
      %cst_73 = arith.constant dense<0.000000e+00> : vector<2xf32>
      %155 = vector.multi_reduction <add>, %152, %cst_73 [1] : vector<2x128xf32> to vector<2xf32>
      %156 = vector.shape_cast %155 : vector<2xf32> to vector<2x1xf32>
      %cst_74 = arith.constant 1.280000e+02 : f32
      %157 = vector.broadcast %cst_74 : f32 to vector<2x1xf32>
      %158 = arith.divf %156, %157 : vector<2x1xf32>
      %159 = vector.broadcast %158 : vector<2x1xf32> to vector<2x128xf32>
      %160 = arith.subf %152, %159 : vector<2x128xf32>
      %161 = arith.mulf %160, %160 : vector<2x128xf32>
      %cst_75 = arith.constant dense<0.000000e+00> : vector<2xf32>
      %162 = vector.multi_reduction <add>, %161, %cst_75 [1] : vector<2x128xf32> to vector<2xf32>
      %163 = vector.shape_cast %162 : vector<2xf32> to vector<2x1xf32>
      %cst_76 = arith.constant 1.280000e+02 : f32
      %164 = vector.broadcast %cst_76 : f32 to vector<2x1xf32>
      %165 = arith.divf %163, %164 : vector<2x1xf32>
      %166 = vector.broadcast %158 : vector<2x1xf32> to vector<2x128xf32>
      %167 = arith.subf %152, %166 : vector<2x128xf32>
      %cst_77 = arith.constant 9.99999974E-6 : f32
      %168 = vector.broadcast %cst_77 : f32 to vector<2x1xf32>
      %169 = arith.addf %165, %168 : vector<2x1xf32>
      %170 = math.rsqrt %169 : vector<2x1xf32>
      %171 = vector.broadcast %170 : vector<2x1xf32> to vector<2x128xf32>
      %172 = arith.mulf %167, %171 : vector<2x128xf32>
      %173 = vector.broadcast %153 : vector<1x128xf32> to vector<2x128xf32>
      %174 = arith.mulf %172, %173 : vector<2x128xf32>
      %175 = vector.broadcast %154 : vector<1x128xf32> to vector<2x128xf32>
      %176 = arith.addf %174, %175 : vector<2x128xf32>
      %177 = arith.truncf %176 : vector<2x128xf32> to vector<2x128xbf16>
      %c0_78 = arith.constant 0 : index
      %c0_79 = arith.constant 0 : index
      %178 = vector.load %arg20[%c0_78, %c0_79] : memref<128x64xbf16, #tpu.memory_space<vmem>>, vector<128x64xbf16>
      %cst_80 = arith.constant dense<0.000000e+00> : vector<2x64xf32>
      %179 = tpu.matmul %177, %178, %cst_80 {dimension_numbers = #tpu.dot_dimension_numbers<[1], [0], [0], [1], [0, 0, 1, 1], [], []>} : vector<2x128xbf16>, vector<128x64xbf16>, vector<2x64xf32> -> vector<2x64xf32>
      %c0_81 = arith.constant 0 : index
      %c0_82 = arith.constant 0 : index
      %c0_83 = arith.constant 0 : index
      %180 = vector.load %arg21[%c0_81, %c0_82, %c0_83] : memref<1x2x64xf32, #tpu.memory_space<vmem>>, vector<1x2x64xf32>
      %181 = vector.shape_cast %180 : vector<1x2x64xf32> to vector<2x64xf32>
      %182 = vector.shape_cast %179 : vector<2x64xf32> to vector<1x2x64xf32>
      tpu.vector_store %arg21[%c0_81, %c0_82, %c0_83], %182 {strides = array<i32>} : memref<1x2x64xf32, #tpu.memory_space<vmem>>, vector<1x2x64xf32>,
    } else {
    }
    return
  }
  func.func @transform_0(%arg0: i32, %arg1: i32, %arg2: memref<4xi32, #tpu.memory_space<smem>>) -> (i32, i32, i32) {
    %c0_i32 = arith.constant 0 : i32
    %c0_i32_0 = arith.constant 0 : i32
    %c0_i32_1 = arith.constant 0 : i32
    return %arg0, %c0_i32, %c0_i32_0 : i32, i32, i32
  }
  func.func @transform_1(%arg0: i32, %arg1: i32, %arg2: memref<4xi32, #tpu.memory_space<smem>>) -> (i32, i32) {
    %c0_i32 = arith.constant 0 : i32
    %c0_i32_0 = arith.constant 0 : i32
    %c0_i32_1 = arith.constant 0 : i32
    return %c0_i32, %c0_i32_0 : i32, i32
  }
  func.func @transform_2(%arg0: i32, %arg1: i32, %arg2: memref<4xi32, #tpu.memory_space<smem>>) -> (i32, i32) {
    %c0_i32 = arith.constant 0 : i32
    %c0_i32_0 = arith.constant 0 : i32
    %c0_i32_1 = arith.constant 0 : i32
    return %c0_i32, %c0_i32_0 : i32, i32
  }
  func.func @transform_3(%arg0: i32, %arg1: i32, %arg2: memref<4xi32, #tpu.memory_space<smem>>) -> (i32, i32, i32) {
    %c0_i32 = arith.constant 0 : i32
    %c0_i32_0 = arith.constant 0 : i32
    %c0_i32_1 = arith.constant 0 : i32
    return %arg1, %c0_i32, %c0_i32_0 : i32, i32, i32
  }
  func.func @transform_4(%arg0: i32, %arg1: i32, %arg2: memref<4xi32, #tpu.memory_space<smem>>) -> (i32, i32, i32) {
    %c0_i32 = arith.constant 0 : i32
    %c0_i32_0 = arith.constant 0 : i32
    %c0_i32_1 = arith.constant 0 : i32
    return %arg1, %c0_i32, %c0_i32_0 : i32, i32, i32
  }
  func.func @transform_5(%arg0: i32, %arg1: i32, %arg2: memref<4xi32, #tpu.memory_space<smem>>) -> (i32, i32, i32) {
    %c0_i32 = arith.constant 0 : i32
    %c0_i32_0 = arith.constant 0 : i32
    %c0_i32_1 = arith.constant 0 : i32
    return %arg1, %c0_i32, %c0_i32_0 : i32, i32, i32
  }
  func.func @transform_6(%arg0: i32, %arg1: i32, %arg2: memref<4xi32, #tpu.memory_space<smem>>) -> (i32, i32, i32) {
    %c0_i32 = arith.constant 0 : i32
    %c0_i32_0 = arith.constant 0 : i32
    %c0_i32_1 = arith.constant 0 : i32
    return %arg1, %c0_i32, %c0_i32_0 : i32, i32, i32
  }
  func.func @transform_7(%arg0: i32, %arg1: i32, %arg2: memref<4xi32, #tpu.memory_space<smem>>) -> (i32, i32, i32) {
    %c0_i32 = arith.constant 0 : i32
    %c0_i32_0 = arith.constant 0 : i32
    %c0_i32_1 = arith.constant 0 : i32
    return %arg1, %c0_i32, %c0_i32_0 : i32, i32, i32
  }
  func.func @transform_8(%arg0: i32, %arg1: i32, %arg2: memref<4xi32, #tpu.memory_space<smem>>) -> (i32, i32, i32) {
    %c0_i32 = arith.constant 0 : i32
    %c0_i32_0 = arith.constant 0 : i32
    %c0_i32_1 = arith.constant 0 : i32
    return %arg1, %c0_i32, %c0_i32_0 : i32, i32, i32
  }
  func.func @transform_9(%arg0: i32, %arg1: i32, %arg2: memref<4xi32, #tpu.memory_space<smem>>) -> (i32, i32, i32) {
    %c0_i32 = arith.constant 0 : i32
    %c0_i32_0 = arith.constant 0 : i32
    %c0_i32_1 = arith.constant 0 : i32
    return %arg1, %c0_i32, %c0_i32_0 : i32, i32, i32
  }
  func.func @transform_10(%arg0: i32, %arg1: i32, %arg2: memref<4xi32, #tpu.memory_space<smem>>) -> (i32, i32, i32) {
    %c0_i32 = arith.constant 0 : i32
    %c0_i32_0 = arith.constant 0 : i32
    %c0_i32_1 = arith.constant 0 : i32
    return %arg1, %c0_i32, %c0_i32_0 : i32, i32, i32
  }
  func.func @transform_11(%arg0: i32, %arg1: i32, %arg2: memref<4xi32, #tpu.memory_space<smem>>) -> (i32, i32, i32) {
    %c0_i32 = arith.constant 0 : i32
    %c0_i32_0 = arith.constant 0 : i32
    %c0_i32_1 = arith.constant 0 : i32
    return %arg1, %c0_i32, %c0_i32_0 : i32, i32, i32
  }
  func.func @transform_12(%arg0: i32, %arg1: i32, %arg2: memref<4xi32, #tpu.memory_space<smem>>) -> (i32, i32, i32) {
    %c0_i32 = arith.constant 0 : i32
    %c0_i32_0 = arith.constant 0 : i32
    %c0_i32_1 = arith.constant 0 : i32
    return %arg1, %c0_i32, %c0_i32_0 : i32, i32, i32
  }
  func.func @transform_13(%arg0: i32, %arg1: i32, %arg2: memref<4xi32, #tpu.memory_space<smem>>) -> (i32, i32, i32) {
    %c0_i32 = arith.constant 0 : i32
    %c0_i32_0 = arith.constant 0 : i32
    %c0_i32_1 = arith.constant 0 : i32
    return %arg1, %c0_i32, %c0_i32_0 : i32, i32, i32
  }
  func.func @transform_14(%arg0: i32, %arg1: i32, %arg2: memref<4xi32, #tpu.memory_space<smem>>) -> (i32, i32, i32) {
    %c0_i32 = arith.constant 0 : i32
    %c0_i32_0 = arith.constant 0 : i32
    %c0_i32_1 = arith.constant 0 : i32
    return %arg1, %c0_i32, %c0_i32_0 : i32, i32, i32
  }
  func.func @transform_15(%arg0: i32, %arg1: i32, %arg2: memref<4xi32, #tpu.memory_space<smem>>) -> (i32, i32) {
    %c0_i32 = arith.constant 0 : i32
    %c0_i32_0 = arith.constant 0 : i32
    %c0_i32_1 = arith.constant 0 : i32
    return %c0_i32, %c0_i32_0 : i32, i32
  }
  func.func @transform_16(%arg0: i32, %arg1: i32, %arg2: memref<4xi32, #tpu.memory_space<smem>>) -> (i32, i32) {
    %c0_i32 = arith.constant 0 : i32
    %c0_i32_0 = arith.constant 0 : i32
    %c0_i32_1 = arith.constant 0 : i32
    return %c0_i32, %c0_i32_0 : i32, i32
  }
  func.func @transform_17(%arg0: i32, %arg1: i32, %arg2: memref<4xi32, #tpu.memory_space<smem>>) -> (i32, i32) {
    %c0_i32 = arith.constant 0 : i32
    %c0_i32_0 = arith.constant 0 : i32
    %c0_i32_1 = arith.constant 0 : i32
    return %c0_i32, %c0_i32_0 : i32, i32
  }
  func.func @transform_18(%arg0: i32, %arg1: i32, %arg2: memref<4xi32, #tpu.memory_space<smem>>) -> (i32, i32, i32) {
    %c0_i32 = arith.constant 0 : i32
    %c0_i32_0 = arith.constant 0 : i32
    %c0_i32_1 = arith.constant 0 : i32
    return %arg0, %c0_i32, %c0_i32_0 : i32, i32, i32
  }
}

</mosaic_0001>

<bundles_post_ra>
// kernel: tpu_custom_call.1
= control target key start
LH: loop header
LB: loop body
LE: loop exit
PB: predicated region body
PF: predicated region fallthrough
CT: control target
= control target key end

     0   :  { %s6717_s0 = inlined_call_operand.vmem [shape: s32[4], index: 0, kind: input, shape index: {}]   ;;  %s6718_s1 = inlined_call_operand.vmem [shape: f32[4,8,128], index: 1, kind: input, shape index: {}]   ;;  %s6719_s2 = inlined_call_operand.vmem [shape: f32[8,128], index: 2, kind: input, shape index: {}]   ;;  %s6720_s3 = inlined_call_operand.vmem [shape: f32[8,8], index: 3, kind: input, shape index: {}]   ;;  %s6721_s4 = inlined_call_operand.vmem [shape: f32[2,1,128], index: 4, kind: input, shape index: {}]   ;;  %s6722_s5 = inlined_call_operand.vmem [shape: f32[2,1,128], index: 5, kind: input, shape index: {}]   ;;  %s6723_s6 = inlined_call_operand.hbm [shape: bf16[2,128,384], index: 6, kind: input, shape index: {}]   ;;  %s6724_s7 = inlined_call_operand.vmem [shape: f32[2,1,384], index: 7, kind: input, shape index: {}]   ;;  %s6725_s8 = inlined_call_operand.hbm [shape: bf16[2,128,128], index: 8, kind: input, shape index: {}]   ;;  %s6726_s9 = inlined_call_operand.vmem [shape: f32[2,1,128], index: 9, kind: input, shape index: {}]   ;;  %s6727_s10 = inlined_call_operand.vmem [shape: f32[2,1,128], index: 10, kind: input, shape index: {}]   ;;  %s6728_s11 = inlined_call_operand.vmem [shape: f32[2,1,128], index: 11, kind: input, shape index: {}]   ;;  %s6729_s12 = inlined_call_operand.hbm [shape: bf16[2,128,512], index: 12, kind: input, shape index: {}]   ;;  %s6730_s13 = inlined_call_operand.vmem [shape: f32[2,1,512], index: 13, kind: input, shape index: {}]   ;;  %s6731_s14 = inlined_call_operand.hbm [shape: bf16[2,512,128], index: 14, kind: input, shape index: {}]   ;;  %s6732_s15 = inlined_call_operand.vmem [shape: f32[2,1,128], index: 15, kind: input, shape index: {}]   ;;  %s6733_s16 = inlined_call_operand.vmem [shape: f32[1,128], index: 16, kind: input, shape index: {}]   ;;  %s6734_s17 = inlined_call_operand.vmem [shape: f32[1,128], index: 17, kind: input, shape index: {}]   ;;  %s6735_s18 = inlined_call_operand.vmem [shape: bf16[128,64], index: 18, kind: input, shape index: {}]   ;;  %s6736_s19 = inlined_call_operand.hbm [shape: f32[2,2,64], index: 19, kind: output, shape index: {}]  }
   0x1   :  { %6762 = sst [smem:[#allocation36_spill]] %s6717_s0 }
   0x2   :  { %6763 = sst [smem:[#allocation37_spill]] %s6718_s1  ;;  %s6779_s20 = sld [smem:[#allocation36_spill]] }
   0x3   :  { %6764 = sst [smem:[#allocation38_spill]] %s6719_s2 }
   0x4   :  { %6765 = sst [smem:[#allocation39_spill]] %s6720_s3 }
   0x5   :  { %6766 = sst [smem:[#allocation40_spill]] %s6723_s6 }
   0x6   :  { %6767 = sst [smem:[#allocation41_spill]] %s6724_s7 }
   0x7   :  { %6768 = sst [smem:[#allocation42_spill]] %s6725_s8 }
   0x8   :  { %6769 = sst [smem:[#allocation43_spill]] %s6726_s9 }
   0x9   :  { %6770 = sst [smem:[#allocation44_spill]] %s6728_s11 }
   0xa   :  { %6771 = sst [smem:[#allocation45_spill]] %s6729_s12 }
   0xb   :  { %6772 = sst [smem:[#allocation46_spill]] %s6730_s13  ;;  %s24_s13 = sshll.u32 %s6779_s20, 4  ;;  %s25_s13 = int_to_ptr.vmem [resolvable:$true] %s24_s13 }
   0xc   :  { %6773 = sst [smem:[#allocation47_spill]] %s6731_s14  ;;  %s5266_s21 = scalar_lea.vmem %s25_s13, 16 }
   0xd   :  { %6774 = sst [smem:[#allocation48_spill]] %s6732_s15  ;;  %p5267_p0 = scmp.ne.s32.totalorder %s25_s13, %s5266_s21 }
   0xe   :  { %6775 = sst [smem:[#allocation49_spill]] %s6733_s16  ;;  %p5271_p1 = scmp.lt.s32.totalorder %s25_s13, %s25_s13 }
   0xf   :  { %6776 = sst [smem:[#allocation50_spill]] %s6734_s17  ;;  %p5272_p2 = scmp.lt.s32.totalorder %s5266_s21, %s5266_s21 }
  0x10   :  { %6777 = sst [smem:[#allocation51_spill]] %s6735_s18 }
  0x11   :  { %6778 = sst [smem:[#allocation52_spill]] %s6736_s19  ;;  %p5273_p3 = por %p5272_p2, %p5271_p1 }
  0x13   :  { %p5274_p4 = pnand %p5273_p3, %p5267_p0 }
  0x15   :  { %5277 = shalt.err (!%p5274_p4)  }
  0x16   :  { %s5532_s1 = smov [#allocation4]  }
  0x17   :  { %27 = dma.vmem_to_smem %s25_s13, 16, %s5532_s1, [#allocation3] }
  0x18   :  { %5470 = dma.done.wait [#allocation3], 16 }
  0x19   :  { %5471 = vsyncadd [#allocation3], 4294967280 }
  0x1a   :  { %29 = sfence }
  0x1b   :  { %30 = vsyncpa [#allocation6], 0 }
  0x1c   :  { %32 = vsyncpa [#allocation6 + $0x1], 0 }
  0x1d   :  { %33 = vsyncpa [#allocation9], 0 }
  0x1e   :  { %35 = vsyncpa [#allocation9 + $0x1], 0 }
  0x1f   :  { %36 = vsyncpa [#allocation12], 0 }
  0x20   :  { %38 = vsyncpa [#allocation12 + $0x1], 0 }
  0x21   :  { %39 = vsyncpa [#allocation7], 0 }
  0x22   :  { %41 = vsyncpa [#allocation7 + $0x1], 0  ;;  %s5657_s22 = smov 0   ;;  %s5659_s2 = smov 0  }
  0x23   :  { %s5661_s23 = smov 0   ;;  %s5663_s24 = smov 0  }
  0x24   :  { %s5665_s13 = smov 0   ;;  %s5667_s25 = smov 0  }
  0x25   :  { %s5669_s3 = smov 0   ;;  %s5671_s26 = smov 0  }
  0x26   :  { %s5673_s27 = smov 0   ;;  %s5675_s28 = smov 0  }
  0x27   :  { %s5677_s29 = smov 0  }
  0x28 LB: > { %6780 = sst [smem:[#allocation19_spill]] %s5490_s22  ;;  %s5711_s0 = sadd.s32 4294967295, %s5530_s29   ;;  %s5530_s29 = sphi %s5677_s29, %s47_s29   ;;  %s5526_s28 = sphi %s5675_s28, %s6853_s28   ;;  %s5522_s27 = sphi %s5673_s27, %s6852_s27   ;;  %s5518_s26 = sphi %s5671_s26, %s6851_s26   ;;  %s5514_s3 = sphi %s5669_s3, %s6850_s3   ;;  %s5510_s25 = sphi %s5667_s25, %s6849_s25   ;;  %s5506_s13 = sphi %s5665_s13, %s6848_s13   ;;  %s5502_s24 = sphi %s5663_s24, %s6847_s24   ;;  %s5498_s23 = sphi %s5661_s23, %s6846_s23   ;;  %s5494_s2 = sphi %s5659_s2, %s6845_s2   ;;  %s5490_s22 = sphi %s5657_s22, %s6844_s22  }
  0x29   : > { %6781 = sst [smem:[#allocation20_spill]] %s5494_s2  ;;  %s4486_s30 = sadd.s32 4294967294, %s5530_s29  }
  0x2a   : > { %6782 = sst [smem:[#allocation21_spill]] %s5498_s23  ;;  %s56_s20 = sadd.s32 1, %s5522_s27 }
  0x2b   : > { %6783 = sst [smem:[#allocation22_spill]] %s5506_s13  ;;  %s59_s21 = sadd.s32 1, %s5526_s28 }
  0x2c   : > { %6784 = sst [smem:[#allocation23_spill]] %s5510_s25  ;;  %p57_p5 = scmp.ge.s32.totalorder %s56_s20, 2 }
  0x2d   : > { %6785 = sst [smem:[#allocation24_spill]] %s5518_s26  ;;  %s186_s1 = sadd.s32 1, %s5510_s25 }
  0x2e   : > { %6786 = sst [smem:[#allocation25_spill]] %s5522_s27  ;;  %p193_p6 = scmp.ne.s32.totalorder %s5510_s25, %s5506_s13 }
  0x2f   : > { %6787 = sst [smem:[#allocation26_spill]] %s5526_s28  ;;  %p194_p7 = scmp.eq.s32.totalorder %s5530_s29, 0 }
  0x30   : > { %6788 = sst [smem:[#allocation27_spill]] %s5530_s29  ;;  %s6855_s20 = smov (%p57_p5, %s56_s20), 0 }
  0x31   : > { %6789 = sst [smem:[#allocation28_spill]] %s6855_s20  ;;  %s6857_s21 = smov (!%p57_p5, %s59_s21), %s5526_s28 }
  0x32   : > { %s183_s19 = ssub.s32 %s5522_s27, %s6855_s20  ;;  %p5725_p8 = por %p194_p7, %p193_p6 }
  0x33   : > { %p61_p9 = scmp.ge.s32.totalorder %s6857_s21, 2  ;;  %p184_p10 = scmp.eq.s32.totalorder %s183_s19, 0 }
  0x34   : > { %p199_p11 = scmp.ne.s32.totalorder %s5506_s13, %s5502_s24  ;;  %p200_p12 = scmp.eq.s32.totalorder %s5711_s0, 0 }
  0x35   : > { %s6859_s21 = smov (%p61_p9, %s6857_s21), 0  ;;  %s509_s15 = sadd.s32 1, %s5498_s23 }
  0x36   : > { %6791 = sst [smem:[#allocation29_spill]] %s6859_s21  ;;  %p5736_p13 = por %p200_p12, %p199_p11 }
  0x37   : > { %s5734_s16 = scalar_select %p184_p10, %s5510_s25, %s186_s1  }
  0x38   : > { %s6793_s20 = scalar_select %p5736_p13, 1, 0 }
  0x39   : > { %6792 = sst [smem:[#allocation30_spill]] %s5734_s16  ;;  %s506_s18 = ssub.s32 %s5526_s28, %s6859_s21 }
  0x3a   : > { %p507_p0 = scmp.eq.s32.totalorder %s506_s18, 0  ;;  %p519_p1 = scmp.ne.s32.totalorder %s5498_s23, %s5494_s2 }
  0x3b   : > { %p520_p2 = scmp.eq.s32.totalorder %s5711_s0, 3  ;;  %p525_p4 = scmp.ne.s32.totalorder %s5494_s2, %s5490_s22 }
  0x3c   : > { %s5747_s19 = scalar_select %p507_p0, %s5498_s23, %s509_s15  }
  0x3d   : > { %p5749_p3 = por %p520_p2, %p519_p1  ;;  %p526_p5 = scmp.eq.s32.totalorder %s4486_s30, 3 }
  0x3e   : > { %6794 = sst [smem:[#allocation31_spill]] %s5747_s19  ;;  %p4956_p6 = scmp.lt.s32.totalorder %s5530_s29, 4 }
  0x3f   : > { %s6795_s24 = scalar_select %p5749_p3, 1, 0 }
  0x40   : > { %s5757_s1 = sand.u32 1, %s5510_s25   ;;  %p5759_p7 = por %p526_p5, %p525_p4 }
  0x41   : > { %6796 = sst [smem:[#allocation32_spill]] %s6795_s24  ;;  %s610_s18 = sand.u32 1, %s5530_s29  }
  0x42   : > { %s6797_s16 = scalar_select %p5759_p7, 1, 0 }
  0x43   : > { %p5766_p9 = pnand %p4956_p6, %p5725_p8  ;;  %s4490_s15 = sshll.u32 %s5757_s1, 6 }
  0x44   : > { %6798 = sst [smem:[#allocation33_spill]] %s6797_s16  ;;  %s4663_s28 = sshll.u32 %s5522_s27, 10 }
  0x45   : > { %s6800_s8 = sld [smem:[#allocation42_spill]]  ;;  %s614_s25 = scalar_lea.vmem [#allocation8], %s4490_s15 }
  0x46   : > { %s621_s16 = sshll.u32 %s614_s25, 4  ;;  %s5780_s17 = scalar_lea.sflag [#allocation9], %s610_s18  ;;  %s5777_s16 = int_to_ptr.vmem [resolvable:$true] %s621_s16 }
  0x47   : > { %p5786_p11 = pneg %p5766_p9 }
  0x4b   : > { %s5775_s30 = scalar_lea.hbm %s6800_s8, %s4663_s28  ;;  %s5283_s25 = scalar_lea.hbm %s6800_s8, 2048 }
  0x4c   : > { %s5278_s22 = scalar_lea.hbm %s5775_s30, 1024  ;;  %p5284_p1 = scmp.lt.u32.totalorder %s5775_s30, %s6800_s8 }
  0x4d   : > { %p5279_p10 = scmp.ne.s32.totalorder %s5775_s30, %s5278_s22  ;;  %p5285_p2 = scmp.lt.u32.totalorder %s5283_s25, %s5278_s22 }
  0x4e   : > { %p5287_p5 = scmp.lt.u32.totalorder %s5278_s22, %s5775_s30 }
  0x4f   : > { %p5281_p12 = pnand %p5786_p11, %p5279_p10  ;;  %p5286_p4 = por %p5285_p2, %p5284_p1 }
  0x51   : > { %p5282_p0 = pneg %p5281_p12  ;;  %p5288_p6 = por %p5287_p5, %p5286_p4 }
  0x53   : > { %p5289_p8 = pnand %p5288_p6, %p5282_p0 }
  0x55   : > { %5292 = shalt.err (!%p5289_p8)
}
  0x56   : > { %s5293_s18 = scalar_lea.vmem %s5777_s16, 1024  ;;  %s5533_s23 = smov [#allocation8]  }
  0x57   : > { %p5294_p10 = scmp.ne.s32.totalorder %s5777_s16, %s5293_s18  ;;  %s5298_s28 = sshll.u32 %s5533_s23, 4  ;;  %s5299_s28 = int_to_ptr.vmem [resolvable:$false] %s5298_s28 }
  0x58   : > { %s5300_s19 = scalar_lea.vmem %s5299_s28, 2048  ;;  %p5301_p3 = scmp.lt.s32.totalorder %s5777_s16, %s5299_s28 }
  0x59   : > { %p5296_p12 = pnand %p5294_p10, %p5786_p11  ;;  %p5302_p13 = scmp.lt.s32.totalorder %s5300_s19, %s5293_s18 }
  0x5b   : > { %p5297_p7 = pneg %p5296_p12  ;;  %p5303_p1 = por %p5302_p13, %p5301_p3 }
  0x5d   : > { %p5304_p2 = pnand %p5303_p1, %p5297_p7 }
  0x5f   : > { %5307 = shalt.err (!%p5304_p2)
}
  0x60   : > { %s6750_s22 = smov 64   ;;  %s6751_s25 = smov 4  }
  0x61   : > { %4945 = dma.hbm_to_vmem [thread:$0]  (!%p5766_p9), %s5775_s30, 1024, %s5777_s16, %s5780_s17, %s6750_s22, %s6750_s22, %s6751_s25  }
  0x62   : > { %p702_p13 = scmp.lt.s32.totalorder %s5530_s29, 5  ;;  %p6802_p3 = scmp.ge.s32.totalorder %s5530_s29, 1 }
  0x63   : > { %s4925_s18 = smul.u32 192, %s5757_s1  ;;  %s6804_s6 = sld [smem:[#allocation40_spill]] }
  0x64   : > { %p5816_p7 = pnand %p6802_p3, %p702_p13  ;;  %s4926_s23 = smul.u32 3072, %s5522_s27 }
  0x65   : > { %s586_s11 = scalar_lea.vmem [#allocation5], %s4925_s18  ;;  %s4493_s16 = sshll.u32 %s5757_s1, 8 }
  0x66   : > { %s6803_s15 = scalar_select %p5816_p7, 1, 0 }
  0x67   : > { %s593_s7 = sshll.u32 %s586_s11, 4  ;;  %s583_s30 = scalar_lea.sflag [#allocation6], %s5757_s1  ;;  %s5827_s7 = int_to_ptr.vmem [resolvable:$true] %s593_s7 }
  0x69   : > { %s5825_s8 = scalar_lea.hbm %s6804_s6, %s4926_s23  ;;  %s5313_s23 = scalar_lea.hbm %s6804_s6, 6144 }
  0x6a   : > { %s5308_s22 = scalar_lea.hbm %s5825_s8, 3072  ;;  %p5314_p5 = scmp.lt.u32.totalorder %s5825_s8, %s6804_s6 }
  0x6b   : > { %p5309_p8 = scmp.ne.s32.totalorder %s5825_s8, %s5308_s22  ;;  %p5315_p6 = scmp.lt.u32.totalorder %s5313_s23, %s5308_s22 }
  0x6c   : > { %p5317_p12 = scmp.lt.u32.totalorder %s5308_s22, %s5825_s8 }
  0x6d   : > { %p5311_p0 = pnand %p5309_p8, %p5786_p11  ;;  %p5316_p10 = por %p5315_p6, %p5314_p5 }
  0x6f   : > { %p5312_p4 = pneg %p5311_p0  ;;  %p5318_p1 = por %p5317_p12, %p5316_p10 }
  0x71   : > { %p5319_p2 = pnand %p5318_p1, %p5312_p4 }
  0x73   : > { %5322 = shalt.err (!%p5319_p2)
}
  0x74   : > { %s5323_s11 = scalar_lea.vmem %s5827_s7, 3072  ;;  %s5536_s29 = smov [#allocation5]  }
  0x75   : > { %p5324_p13 = scmp.ne.s32.totalorder %s5827_s7, %s5323_s11  ;;  %s5328_s25 = sshll.u32 %s5536_s29, 4  ;;  %s5329_s25 = int_to_ptr.vmem [resolvable:$false] %s5328_s25 }
  0x76   : > { %s5330_s18 = scalar_lea.vmem %s5329_s25, 6144  ;;  %p5331_p0 = scmp.lt.s32.totalorder %s5827_s7, %s5329_s25 }
  0x77   : > { %p5326_p3 = pnand %p5324_p13, %p5786_p11  ;;  %p5332_p7 = scmp.lt.s32.totalorder %s5330_s18, %s5323_s11 }
  0x79   : > { %p5327_p8 = pneg %p5326_p3  ;;  %p5333_p5 = por %p5332_p7, %p5331_p0 }
  0x7b   : > { %p5334_p6 = pnand %p5333_p5, %p5327_p8 }
  0x7d   : > { %5337 = shalt.err (!%p5334_p6)
}
  0x7e   : > { %s5537_s22 = smov 192   ;;  %s5538_s23 = smov 12  }
  0x7f   : > { %4942 = dma.hbm_to_vmem [thread:$0]  (!%p5766_p9), %s5825_s8, 3072, %s5827_s7, %s583_s30, %s5537_s22, %s5537_s22, %s5538_s23  }
  0x80   : > { %s4664_s28 = sshll.u32 %s5522_s27, 12  ;;  %s6805_s12 = sld [smem:[#allocation45_spill]] }
  0x81   : > { %s653_s25 = scalar_lea.vmem [#allocation10], %s4493_s16 }
  0x82   : > { %s660_s18 = sshll.u32 %s653_s25, 4  ;;  %s5864_s18 = int_to_ptr.vmem [resolvable:$true] %s660_s18 }
  0x86   : > { %s5860_s29 = scalar_lea.hbm %s6805_s12, %s4664_s28  ;;  %s5343_s30 = scalar_lea.hbm %s6805_s12, 8192 }
  0x87   : > { %s5338_s6 = scalar_lea.hbm %s5860_s29, 4096  ;;  %p5344_p12 = scmp.lt.u32.totalorder %s5860_s29, %s6805_s12 }
  0x88   : > { %p5339_p7 = scmp.ne.s32.totalorder %s5860_s29, %s5338_s6  ;;  %p5345_p1 = scmp.lt.u32.totalorder %s5343_s30, %s5338_s6 }
  0x89   : > { %p5347_p13 = scmp.lt.u32.totalorder %s5338_s6, %s5860_s29 }
  0x8a   : > { %p5341_p4 = pnand %p5339_p7, %p5786_p11  ;;  %p5346_p2 = por %p5345_p1, %p5344_p12 }
  0x8c   : > { %p5342_p10 = pneg %p5341_p4  ;;  %p5348_p3 = por %p5347_p13, %p5346_p2 }
  0x8e   : > { %p5349_p8 = pnand %p5348_p3, %p5342_p10 }
  0x90   : > { %5352 = shalt.err (!%p5349_p8)
}
  0x91   : > { %s5353_s19 = scalar_lea.vmem %s5864_s18, 4096  ;;  %s5539_s11 = smov [#allocation10]  }
  0x92   : > { %p5354_p0 = scmp.ne.s32.totalorder %s5864_s18, %s5353_s19  ;;  %s5358_s25 = sshll.u32 %s5539_s11, 4  ;;  %s5359_s25 = int_to_ptr.vmem [resolvable:$false] %s5358_s25 }
  0x93   : > { %s5360_s7 = scalar_lea.vmem %s5359_s25, 8192  ;;  %p5361_p7 = scmp.lt.s32.totalorder %s5864_s18, %s5359_s25 }
  0x94   : > { %p5356_p5 = pnand %p5354_p0, %p5786_p11  ;;  %p5362_p4 = scmp.lt.s32.totalorder %s5360_s7, %s5353_s19 }
  0x96   : > { %p5357_p6 = pneg %p5356_p5  ;;  %p5363_p12 = por %p5362_p4, %p5361_p7 }
  0x98   : > { %p5364_p1 = pnand %p5363_p12, %p5357_p6 }
  0x9a   : > { %5367 = shalt.err (!%p5364_p1)
}
  0x9b   : > { %s5540_s6 = smov 256   ;;  %s5541_s8 = smov 16  }
  0x9c   : > { %4948 = dma.hbm_to_vmem [thread:$0]  (!%p5766_p9), %s5860_s29, 4096, %s5864_s18, %s5780_s17, %s5540_s6, %s5540_s6, %s5541_s8  }
  0x9d   : > { %s6806_s14 = sld [smem:[#allocation47_spill]]  ;;  %s681_s19 = scalar_lea.vmem [#allocation11], %s4493_s16 }
  0x9e   : > { %s688_s11 = sshll.u32 %s681_s19, 4  ;;  %s678_s25 = scalar_lea.sflag [#allocation12], %s5757_s1  ;;  %s5897_s11 = int_to_ptr.vmem [resolvable:$true] %s688_s11 }
  0xa3   : > { %s5893_s23 = scalar_lea.hbm %s6806_s14, %s4664_s28  ;;  %s5373_s28 = scalar_lea.hbm %s6806_s14, 8192 }
  0xa4   : > { %s5368_s7 = scalar_lea.hbm %s5893_s23, 4096  ;;  %p5374_p3 = scmp.lt.u32.totalorder %s5893_s23, %s6806_s14 }
  0xa5   : > { %p5369_p10 = scmp.ne.s32.totalorder %s5893_s23, %s5368_s7  ;;  %p5375_p8 = scmp.lt.u32.totalorder %s5373_s28, %s5368_s7 }
  0xa6   : > { %p5377_p5 = scmp.lt.u32.totalorder %s5368_s7, %s5893_s23 }
  0xa7   : > { %p5371_p2 = pnand %p5369_p10, %p5786_p11  ;;  %p5376_p0 = por %p5375_p8, %p5374_p3 }
  0xa9   : > { %p5372_p13 = pneg %p5371_p2  ;;  %p5378_p6 = por %p5377_p5, %p5376_p0 }
  0xab   : > { %p5379_p7 = pnand %p5378_p6, %p5372_p13 }
  0xad   : > { %5382 = shalt.err (!%p5379_p7)
}
  0xae   : > { %s5383_s16 = scalar_lea.vmem %s5897_s11, 4096  ;;  %s5542_s8 = smov [#allocation11]  }
  0xaf   : > { %p5384_p4 = scmp.ne.s32.totalorder %s5897_s11, %s5383_s16  ;;  %s5388_s30 = sshll.u32 %s5542_s8, 4  ;;  %s5389_s30 = int_to_ptr.vmem [resolvable:$false] %s5388_s30 }
  0xb0   : > { %s5390_s22 = scalar_lea.vmem %s5389_s30, 8192  ;;  %p5391_p10 = scmp.lt.s32.totalorder %s5897_s11, %s5389_s30 }
  0xb1   : > { %p5386_p12 = pnand %p5384_p4, %p5786_p11  ;;  %p5392_p2 = scmp.lt.s32.totalorder %s5390_s22, %s5383_s16 }
  0xb3   : > { %p5387_p1 = pneg %p5386_p12  ;;  %p5393_p3 = por %p5392_p2, %p5391_p10 }
  0xb5   : > { %p5394_p8 = pnand %p5393_p3, %p5387_p1 }
  0xb7   : > { %5397 = shalt.err (!%p5394_p8)
}
  0xb8   : > { %s6807_s19 = smov 4   ;;  %s6808_s7 = smov 64  }
  0xb9   : > { %4951 = dma.hbm_to_vmem [thread:$0]  (!%p5766_p9), %s5893_s23, 4096, %s5897_s11, %s678_s25, %s6808_s7, %s6808_s7, %s6807_s19  }
  0xba   : > { %p6809_p11 = scmp.ne.s32.totalorder %s6803_s15, 0 }
  0xbc   : > { %706 = sbr.rel (%p6809_p11) target bundleno = 3514 (0xdba), region = 92 }
  0xc3   : > { %s708_s24 = sand.u32 1, %s5506_s13   ;;  %p6810_p13 = scmp.ne.s32.totalorder %s6793_s20, 0 }
  0xc4   : > { %s4927_s17 = smul.u32 192, %s708_s24  ;;  %s709_s29 = scalar_lea.sflag [#allocation6], %s708_s24 }
  0xc6   : > { %s5929_s28 = scalar_lea.vmem [#allocation5], %s4927_s17 }
  0xc7   : > { %5473 = dma.done.wait (%p6810_p13), %s709_s29, 3072  }
  0xc8   : > { %5475 = vsyncadd (%p6810_p13), %s709_s29, 4294964224  ;;  %s717_s21 = sand.u32 1, %s5711_s0   ;;  %s4500_s1 = sshll.u32 %s708_s24, 6 }
  0xc9   : > { %s718_s23 = scalar_lea.sflag [#allocation9], %s717_s21  ;;  %s5936_s11 = scalar_lea.vmem [#allocation8], %s4500_s1 }
  0xca   : > { %5477 = dma.done.wait (%p6810_p13), %s718_s23, 5120  }
  0xcb   : > { %5479 = vsyncadd (%p6810_p13), %s718_s23, 4294962176  ;;  %s4501_s15 = sshll.u32 %s708_s24, 8  ;;  %s736_s18 = scalar_lea.sflag [#allocation12], %s708_s24 }
  0xcc   : > { %s5942_s25 = scalar_lea.vmem [#allocation10], %s4501_s15  ;;  %s5944_s6 = scalar_lea.vmem [#allocation11], %s4501_s15 }
  0xcd   : > { %6811 = sst [smem:[#allocation34_spill]] %s5944_s6 }
  0xce   : > { %5481 = dma.done.wait (%p6810_p13), %s736_s18, 4096  }
  0xcf   : > { %5483 = vsyncadd (%p6810_p13), %s736_s18, 4294963200  ;;  %s6754_s0 = sand.u32 1, %s5494_s2   ;;  %s5952_s16 = sshll.u32 %s5518_s26, 1 }
  0xd0   : > { %6812 = sst [smem:[#allocation35_spill]] %s5952_s16  ;;  %s5956_s8 = sshll.u32 %s6754_s0, 1 }
  0xd1   : > { %p839_p9 = scmp.lt.s32.totalorder %s5952_s16, 3  ;;  %p844_p0 = scmp.lt.s32.totalorder %s5514_s3, 1 }
  0xd2   : > { %s6813_s24 = sld [smem:[#allocation37_spill]]  ;;  %s6816_s21 = sld [smem:[#allocation44_spill]] }
  0xd3   : > { %s840_s30 = scalar_select %p839_p9, %s5952_s16, 3 }
  0xd4   : > { %s5962_s22 = scalar_select %p844_p0, %s5514_s3, 1 }
  0xd5   : > { %s4505_s20 = sshll.u32 %s840_s30, 3  ;;  %s6817_s16 = sld [smem:[#allocation48_spill]] }
  0xd6   : > { %s4928_s0 = smul.u32 3, %s5962_s22  ;;  %s859_s30 = scalar_lea.vmem %s6727_s10, %s5962_s22 }
  0xd7   : > { %s4506_s23 = sshll.u32 %s5962_s22, 2  ;;  %s6818_s27 = sld [smem:[#allocation46_spill]] }
  0xd8   : > { %s842_s17 = scalar_lea.vmem %s6813_s24, %s4505_s20  ;;  %s6815_s20 = sld [smem:[#allocation41_spill]] }
  0xd9   : > { %s862_s1 = scalar_lea.vmem %s6816_s21, %s5962_s22  ;;  %s837_s2 = scalar_lea.vmem [#allocation13], %s5956_s8 }
  0xda   : > { %p4507_p5 = scmp.ne.s32.totalorder %s5514_s3, 0 }
  0xdb   : > { %s869_s6 = scalar_lea.vmem %s6817_s16, %s5962_s22  ;;  %v877_v0 = vld [vmem:[%s842_s17] sm:$0xff] (!%p4507_p5)  ;;  %v878_v2 = vld [vmem:[%s842_s17 + $0x8] sm:$0xff] (!%p4507_p5) }
  0xdc   : > { %876 = sbr.rel (%p4507_p5) target bundleno = 232 (0xe8), region = 112 }
  0xdd   : > { %s6001_s9 = scalar_lea.vmem %s6818_s27, %s4506_s23 }
  0xde   : > { %s5987_s7 = scalar_lea.vmem %s6815_s20, %s4928_s0  ;;  %s6819_s0 = sld [smem:[#allocation38_spill]] (!%p4507_p5) }
  0xe4   : > { %v879_v1 = vld [vmem:[%s6819_s0] sm:$0xff] }
  0xe5   : > { %v880_v3 = vadd.f32 %v879_v1, %v877_v0  ;;  %v881_v4 = vadd.f32 %v879_v1, %v878_v2 }
  0xe7   : > { %882 = vst [vmem:[#allocation2] sm:$0xff] %v880_v3  ;;  %883 = vst [vmem:[#allocation2 + $0x8] sm:$0xff] %v881_v4 }
  0xe8 PF: > { %v5078_v7 = vld [vmem:[%s5929_s28 + $0x4] ss:$12 sps:$4 sm:$0xff]   ;;  %v5080_v8 = vld [vmem:[%s5929_s28] ss:$12 sps:$4 sm:$0xff]   ;;  %v5543_v9 = vmov 0.0   ;;  %v5544_v35 = vmov 0   ;;  %s6820_s16 = scalar_lea.vmem %s6721_s4, %s5962_s22  ;;  %s6821_s19 = scalar_lea.vmem %s6722_s5, %s5962_s22  ;;  %v962_v58 = vlaneseq }
  0xe9   : > { %4769 = vmatprep.subr.bf16.mxu1 %v5543_v9  ;;  %v5081_v10 = vld [vmem:[%s5929_s28 + $0x8] ss:$12 sps:$4 sm:$0xff]   ;;  %1105 = vmatprep.subr.bf16.mxu0 %v5078_v7  ;;  %v5084_v20 = vld [vmem:[%s5929_s28 + $0x18] ss:$12 sps:$4 sm:$0xff]   ;;  %v5085_v21 = vld [vmem:[%s5929_s28 + $0x20] ss:$12 sps:$4 sm:$0xff]  }
  0xea   : > { %v5082_v11 = vld [vmem:[%s5929_s28 + $0x1c] ss:$12 sps:$4 sm:$0xff]   ;;  %1106 = vmatpush1.bf16.msra.mxu0 %v5080_v8  ;;  %4770 = vmatpush3.bf16.msra.mxu1 %v5081_v10  ;;  %v5086_v22 = vld [vmem:[%s5929_s28 + $0x34] ss:$12 sps:$4 sm:$0xff]   ;;  %v5089_v24 = vld [vmem:[%s5929_s28 + $0x38] ss:$12 sps:$4 sm:$0xff]  }
  0xeb   : > { %1107 = vmatprep.subr.bf16.mxu0 %v5082_v11  ;;  %4771 = vmatprep.subr.bf16.mxu1 %v5543_v9  ;;  %v5088_v23 = vld [vmem:[%s5929_s28 + $0x30] ss:$12 sps:$4 sm:$0xff]   ;;  %v5090_v25 = vld [vmem:[%s5929_s28 + $0x4c] ss:$12 sps:$4 sm:$0xff]   ;;  %v5092_v26 = vld [vmem:[%s5929_s28 + $0x48] ss:$12 sps:$4 sm:$0xff]  }
  0xec   : > { %v5093_v27 = vld [vmem:[%s5929_s28 + $0x50] ss:$12 sps:$4 sm:$0xff]   ;;  %v5096_v29 = vld [vmem:[%s5929_s28 + $0x60] ss:$12 sps:$4 sm:$0xff]   ;;  %v5097_v30 = vld [vmem:[%s5929_s28 + $0x68] ss:$12 sps:$4 sm:$0xff]   ;;  %1137 = vmatprep.mubr.bf16.mxu0 %v5544_v35 }
  0xed   : > { %v5094_v28 = vld [vmem:[%s5929_s28 + $0x64] ss:$12 sps:$4 sm:$0xff]   ;;  %v5098_v31 = vld [vmem:[%s5929_s28 + $0x7c] ss:$12 sps:$4 sm:$0xff]   ;;  %v5101_v33 = vld [vmem:[%s5929_s28 + $0x80] ss:$12 sps:$4 sm:$0xff]  }
  0xee   : > { %v884_v5 = vld [vmem:[#allocation2] sm:$0xff]  ;;  %v885_v6 = vld [vmem:[#allocation2 + $0x8] sm:$0xff]  ;;  %1108 = vmatpush1.bf16.msra.mxu0 %v5084_v20  ;;  %4772 = vmatpush3.bf16.msra.mxu1 %v5085_v21  ;;  %vm5545_vm0 = vmmov 0   ;;  %v6069_v59 = vshrl.u32 %v962_v58, 7  ;;  %s5546_s20 = smov 64   ;;  %s5548_s24 = smov 32  }
  0xef   : > { %888 = vadd.xlane.f32.xlu0 %v884_v5  ;;  %4773 = vmatprep.subr.bf16.mxu1 %v5543_v9  ;;  %v5100_v32 = vld [vmem:[%s5929_s28 + $0x78] ss:$12 sps:$4 sm:$0xff]   ;;  %v5102_v34 = vld [vmem:[%s5929_s28 + $0x94] ss:$12 sps:$4 sm:$0xff]   ;;  %v5104_v36 = vld [vmem:[%s5929_s28 + $0x90] ss:$12 sps:$4 sm:$0xff]  }
  0xf0   : > { %1109 = vmatprep.subr.bf16.mxu0 %v5086_v22  ;;  %4785 = vmatprep.mubr.msk.bf16.mxu1 %vm5545_vm0, %v5543_v9  ;;  %v5105_v37 = vld [vmem:[%s5929_s28 + $0x98] ss:$12 sps:$4 sm:$0xff]   ;;  %v5108_v39 = vld [vmem:[%s5929_s28 + $0xa8] ss:$12 sps:$4 sm:$0xff]   ;;  %v5109_v40 = vld [vmem:[%s5929_s28 + $0xb0] ss:$12 sps:$4 sm:$0xff]  }
  0xf1   : > { %v5106_v38 = vld [vmem:[%s5929_s28 + $0xac] ss:$12 sps:$4 sm:$0xff]   ;;  %v4508_v49 = vld [vmem:[%s6820_s16] ss:$0 sm:$0xff]  ;;  %v964_v60 = vsub.s32 0, %v6069_v59  ;;  %v968_v61 = vsub.s32 1, %v6069_v59 }
  0xf2   : > { %1110 = vmatpush1.bf16.msra.mxu0 %v5088_v23  ;;  %4774 = vmatpush3.bf16.msra.mxu1 %v5089_v24  ;;  %v4509_v53 = vld [vmem:[%s6821_s19] ss:$0 sm:$0xff]  ;;  %vm2092_vm1 = vcmask 261120   ;;  %s6822_s23 = sld [smem:[#allocation39_spill]]  ;;  %vm2461_vm2 = vcmask 64512   ;;  %vm2561_vm3 = vcmask 1043456  }
  0xf3   : > { %890 = vadd.xlane.f32.xlu0 %v885_v6  ;;  %4775 = vmatprep.subr.bf16.mxu1 %v5543_v9  ;;  %v6074_v62 = vld [vmem:[%s5987_s7] sm:$0x7]  ;;  %s5547_s7 = smov 96   ;;  %vm3225_vm4 = vcmask 523264   ;;  %vm3228_vm5 = vcmask 785408   ;;  %s6823_s12 = sld [smem:[#allocation43_spill]] }
  0xf4   : > { %1111 = vmatprep.subr.bf16.mxu0 %v5090_v25  ;;  %v965_v63 = vrot.slane %v6074_v62, %v964_v60  ;;  %v969_v0 = vrot.slane %v6074_v62, %v968_v61  ;;  %s6825_s13 = sld [smem:[#allocation34_spill]]  ;;  %p4646_p6 = scmp.ne.s32.totalorder %s5514_s3, 1 }
  0xf5   : > { %vm4092_vm6 = vcmask (!%p4646_p6), 1040384   ;;  %vm4096_vm7 = vcmask (!%p4646_p6), 1041408   ;;  %s6829_s3 = sld [smem:[#allocation51_spill]] (!%p4646_p6)  ;;  %vm5552_vm8 = vmmov (!%p4646_p6), 0   ;;  %vm4229_vm9 = vcmask (!%p4646_p6), 517120  }
  0xf6   : > { %1112 = vmatpush1.bf16.msra.mxu0 %v5092_v26  ;;  %4776 = vmatpush3.bf16.msra.mxu1 %v5093_v27 }
  0xf7   : > { %4777 = vmatprep.subr.bf16.mxu1 %v5543_v9  ;;  %1113 = vmatprep.subr.bf16.mxu0 %v5094_v28 }
  0xf9   : > { %s6824_s14 = scalar_lea.vmem %s6823_s12, %s5962_s22 }
  0xfa   : > { %1114 = vmatpush1.bf16.msra.mxu0 %v5096_v29  ;;  %4778 = vmatpush3.bf16.msra.mxu1 %v5097_v30 }
  0xfb   : > { %1115 = vmatprep.subr.bf16.mxu0 %v5098_v31  ;;  %4779 = vmatprep.subr.bf16.mxu1 %v5543_v9  ;;  %s6830_s21 = smov (!%p4646_p6), %s6829_s3 }
  0xfe   : > { %1116 = vmatpush1.bf16.msra.mxu0 %v5100_v32  ;;  %4780 = vmatpush3.bf16.msra.mxu1 %v5101_v33 }
  0xff   : > { %1117 = vmatprep.subr.bf16.mxu0 %v5102_v34  ;;  %4781 = vmatprep.subr.bf16.mxu1 %v5543_v9 }
 0x102   : > { %1118 = vmatpush1.bf16.msra.mxu0 %v5104_v36  ;;  %4782 = vmatpush3.bf16.msra.mxu1 %v5105_v37 }
 0x103   : > { %1119 = vmatprep.subr.bf16.mxu0 %v5106_v38  ;;  %4783 = vmatprep.subr.bf16.mxu1 %v5543_v9 }
 0x106   : > { %1120 = vmatpush1.bf16.msra.mxu0 %v5108_v39  ;;  %4784 = vmatpush3.bf16.msra.mxu1 %v5109_v40 }
 0x107   : > { %4789 = vmatprep.subr.bf16.mxu1 %v5543_v9  ;;  %4813 = vmatprep.subr.bf16.mxu0 %v5543_v9 }
 0x17c   : > { %v889_v12 = vpop.xlane.xlu0 %888 }
 0x17d   : > { %v893_v13 = vmul.f32 0.0078125, %v889_v12 }
 0x17f   : > { %v6014_v14 = vsub.f32 %v884_v5, %v893_v13 }
 0x180   : > { %v891_v15 = vpop.xlane.xlu0 %890 }
 0x181   : > { %v894_v16 = vmul.f32 0.0078125, %v891_v15  ;;  %v897_v17 = vmul.f32 %v6014_v14, %v6014_v14 }
 0x183   : > { %v6018_v18 = vsub.f32 %v885_v6, %v894_v16  ;;  %899 = vadd.xlane.f32.xlu1 %v897_v17  ;;  %v5549_v16 = vmov 1983009808  }
 0x184   : > { %v1214_v17 = vunpack.c.l.s4 %v5549_v16 }
 0x185   : > { %v898_v19 = vmul.f32 %v6018_v18, %v6018_v18 }
 0x186   : > { %v1215_v20 = vunpack.c.0.s8 %v1214_v17 }
 0x187   : > { %901 = vadd.xlane.f32.xlu1 %v898_v19 }
 0x188   : > { %v6109_v24 = vsub.s32 %v1215_v20, %v6069_v59 }
 0x210   : > { %v900_v41 = vpop.xlane.xlu1 %899 }
 0x211   : > { %v903_v42 = vmul.f32 0.0078125, %v900_v41 }
 0x213   : > { %v905_v43 = vadd.f32 1e-05, %v903_v42 }
 0x214   : > { %v902_v44 = vpop.xlane.xlu1 %901 }
 0x215   : > { %5198 = vrsqrt.f32 %v905_v43  ;;  %v904_v45 = vmul.f32 0.0078125, %v902_v44 }
 0x217   : > { %v906_v46 = vadd.f32 1e-05, %v904_v45 }
 0x219   : > { %5200 = vrsqrt.f32 %v906_v46 }
 0x21f   : > { %v5199_v47 = vpop.eup %5198 }
 0x220   : > { %v909_v48 = vmul.f32 %v5199_v47, %v6014_v14 }
 0x222   : > { %v917_v52 = vmul.f32 %v4508_v49, %v909_v48 }
 0x223   : > { %v5201_v50 = vpop.eup %5200 }
 0x224   : > { %v910_v51 = vmul.f32 %v5201_v50, %v6018_v18  ;;  %v925_v55 = vadd.f32 %v4509_v53, %v917_v52  ;;  %v5550_v18 = vmov 1934713408  }
 0x225   : > { %v1246_v19 = vunpack.c.l.s4 %v5550_v18 }
 0x226   : > { %v918_v54 = vmul.f32 %v4508_v49, %v910_v51 }
 0x227   : > { %v1247_v23 = vunpack.c.0.s8 %v1246_v19 }
 0x228   : > { %v926_v56 = vadd.f32 %v4509_v53, %v918_v54 }
 0x229   : > { %v6112_v31 = vsub.s32 %v1247_v23, %v6069_v59 }
 0x22a   : > { %v927_v57 = vpack.c.bf16 %v926_v56, %v925_v55 }
 0x22c   : > { %1138 = vmatmul.mubr.bf16.vlgmr.msra.gmra.mrb[0].mxu0 %v927_v57  ;;  %4786 = vmatmul.mubr.bf16.vlgmr.msra.gmra.mrb[0].mxu1 %v927_v57 }
 0x22d   : > { %4791 = vmatprep.mubr.msk.bf16.mxu1 %vm5545_vm0, %v5543_v9  ;;  %4815 = vmatprep.mubr.msk.bf16.mxu0 %vm5545_vm0, %v5543_v9 }
 0x2ff   : > { %v1139_v1 = vpop.f32.mrb[0].mxu0  ;;  %v6082_v2 = vpop.f32.mrb[0].mxu1 }
 0x300   : > { %v1141_v3 = vpop.f32.mrb[1].mxu0  ;;  %v4787_v4 = vpop.f32.mrb[1].mxu1  ;;  %v1140_v5 = vadd.f32 %v1139_v1, %v965_v63 }
 0x301   : > { %v1142_v6 = vadd.f32 %v1141_v3, %v969_v0  ;;  %v1143_v7 = vpop.f32.mrb[2].mxu0  ;;  %v6084_v8 = vpop.f32.mrb[2].mxu1 }
 0x302   : > { %v1145_v10 = vpop.f32.mrb[3].mxu0  ;;  %v4788_v11 = vpop.f32.mrb[3].mxu1  ;;  %v1189_v12 = vmul.f32 0.17677669, %v1140_v5  ;;  %v1144_v14 = vadd.f32 %v1143_v7, %v965_v63 }
 0x303   : > { %1499 = vrot.lane.b32.xlu1 %v1142_v6, %s5546_s20  ;;  %1493 = vrot.lane.b32.xlu0 %v1142_v6, %s5547_s7  ;;  %v6090_v13 = vadd.f32 %v1145_v10, %v969_v0 }
 0x304   : > { %v6098_v15 = vmul.f32 0.17677669, %v1144_v14 }
 0x307   : > { %1505 = vrot.lane.b32.xlu1 %v1142_v6, %s5548_s24  ;;  %1199 = vrot.lane.b32.xlu0 %v1189_v12, %s5546_s20 }
 0x30b   : > { %1495 = vrot.lane.b32.xlu0 %v6090_v13, %s5547_s7  ;;  %1193 = vrot.lane.b32.xlu1 %v1189_v12, %s5547_s7 }
 0x30f   : > { %1507 = vrot.lane.b32.xlu0 %v6090_v13, %s5548_s24  ;;  %1205 = vrot.lane.b32.xlu1 %v1189_v12, %s5548_s24 }
 0x313   : > { %1201 = vrot.lane.b32.xlu0 %v6098_v15, %s5546_s20  ;;  %1501 = vrot.lane.b32.xlu1 %v6090_v13, %s5546_s20 }
 0x317   : > { %1195 = vrot.lane.b32.xlu1 %v6098_v15, %s5547_s7 }
 0x31b   : > { %1207 = vrot.lane.b32.xlu1 %v6098_v15, %s5548_s24 }
 0x375   : > { %v1500_v21 = vpop.permute.xlu1 %1499  ;;  %v1494_v22 = vpop.permute.xlu0 %1493 }
 0x376   : > { %v1511_v25 = vcombine.low %v1142_v6, %v1500_v21  ;;  %v1512_v26 = vcombine.high %v1142_v6, %v1500_v21 }
 0x378   : > { %v1519_v32 = vrot.slane %v1511_v25, %v6109_v24  ;;  %v1526_v33 = vrot.slane %v1512_v26, %v6109_v24 }
 0x379   : > { %v1506_v27 = vpop.permute.xlu1 %1505  ;;  %v1200_v28 = vpop.permute.xlu0 %1199 }
 0x37a   : > { %v1527_v29 = vcombine.low %v1494_v22, %v1506_v27  ;;  %v1528_v30 = vcombine.high %v1494_v22, %v1506_v27  ;;  %v1211_v43 = vcombine.low %v1189_v12, %v1200_v28  ;;  %v1212_v44 = vcombine.high %v1189_v12, %v1200_v28 }
 0x37c   : > { %v1535_v34 = vrot.slane %v1527_v29, %v6109_v24  ;;  %v1542_v36 = vrot.slane %v1528_v30, %v6109_v24  ;;  %v1219_v1 = vrot.slane %v1211_v43, %v6109_v24  ;;  %v1226_v3 = vrot.slane %v1212_v44, %v6109_v24 }
 0x37d   : > { %v1496_v37 = vpop.permute.xlu0 %1495  ;;  %v1194_v38 = vpop.permute.xlu1 %1193 }
 0x37e   : > { %v1543_v39 = vcombine.low %v1519_v32, %v1535_v34  ;;  %v1544_v40 = vcombine.high %v1519_v32, %v1535_v34  ;;  %v1559_v41 = vcombine.low %v1526_v33, %v1542_v36  ;;  %v1560_v42 = vcombine.high %v1526_v33, %v1542_v36 }
 0x380   : > { %v1551_v45 = vrot.slane %v1543_v39, %v6112_v31  ;;  %v1558_v46 = vrot.slane %v1544_v40, %v6112_v31  ;;  %v1567_v47 = vrot.slane %v1559_v41, %v6112_v31  ;;  %v1574_v48 = vrot.slane %v1560_v42, %v6112_v31 }
 0x381   : > { %v1508_v49 = vpop.permute.xlu0 %1507  ;;  %v1206_v50 = vpop.permute.xlu1 %1205 }
 0x382   : > { %v1647_v51 = vcombine.low %v1551_v45, %v1558_v46  ;;  %v4538_v52 = vcombine.high %v1551_v45, %v1558_v46  ;;  %v1663_v53 = vcombine.low %v1567_v47, %v1574_v48  ;;  %v4539_v54 = vcombine.high %v1567_v47, %v1574_v48 }
 0x383   : > { %v1595_v55 = vcombine.low %v1496_v37, %v1508_v49  ;;  %v1596_v56 = vcombine.high %v1496_v37, %v1508_v49  ;;  %v1227_v57 = vcombine.low %v1194_v38, %v1206_v50  ;;  %v1228_v58 = vcombine.high %v1194_v38, %v1206_v50 }
 0x384   : > { %v6123_v63 = vrot.slane %v1647_v51, %v6109_v24  ;;  %v6126_v0 = vrot.slane %v4538_v52, %v6109_v24  ;;  %v6131_v4 = vrot.slane %v1663_v53, %v6109_v24  ;;  %v6134_v5 = vrot.slane %v4539_v54, %v6109_v24 }
 0x385   : > { %v1235_v6 = vrot.slane %v1227_v57, %v6109_v24  ;;  %v1242_v7 = vrot.slane %v1228_v58, %v6109_v24  ;;  %v1202_v10 = vpop.permute.xlu0 %1201  ;;  %v1502_v11 = vpop.permute.xlu1 %1501  ;;  %v1603_v12 = vrot.slane %v1595_v55, %v6109_v24  ;;  %v1610_v14 = vrot.slane %v1596_v56, %v6109_v24 }
 0x386   : > { %v1579_v16 = vcombine.low %v6090_v13, %v1502_v11  ;;  %v1580_v17 = vcombine.high %v6090_v13, %v1502_v11  ;;  %v1279_v22 = vcombine.low %v6098_v15, %v1202_v10  ;;  %v1280_v23 = vcombine.high %v6098_v15, %v1202_v10 }
 0x387   : > { %v1243_v18 = vcombine.low %v1219_v1, %v1235_v6  ;;  %v1244_v19 = vcombine.high %v1219_v1, %v1235_v6  ;;  %v1259_v20 = vcombine.low %v1226_v3, %v1242_v7  ;;  %v1260_v21 = vcombine.high %v1226_v3, %v1242_v7 }
 0x388   : > { %v1587_v25 = vrot.slane %v1579_v16, %v6109_v24  ;;  %v1594_v26 = vrot.slane %v1580_v17, %v6109_v24  ;;  %v1679_v6 = vcombine.low %v6123_v63, %v6126_v0  ;;  %v1695_v7 = vcombine.low %v6131_v4, %v6134_v5 }
 0x389   : > { %v1251_v27 = vrot.slane %v1243_v18, %v6112_v31  ;;  %v1258_v28 = vrot.slane %v1244_v19, %v6112_v31  ;;  %v1267_v29 = vrot.slane %v1259_v20, %v6112_v31  ;;  %v1274_v13 = vrot.slane %v1260_v21, %v6112_v31  ;;  %v1196_v30 = vpop.permute.xlu1 %1195 }
 0x38a   : > { %v1611_v32 = vcombine.low %v1587_v25, %v1603_v12  ;;  %v1612_v33 = vcombine.high %v1587_v25, %v1603_v12  ;;  %v1627_v34 = vcombine.low %v1594_v26, %v1610_v14  ;;  %v1628_v36 = vcombine.high %v1594_v26, %v1610_v14 }
 0x38b   : > { %v1347_v37 = vcombine.low %v1251_v27, %v1258_v28  ;;  %v4534_v38 = vcombine.high %v1251_v27, %v1258_v28  ;;  %v1363_v15 = vcombine.low %v1267_v29, %v1274_v13  ;;  %v4535_v39 = vcombine.high %v1267_v29, %v1274_v13 }
 0x38c   : > { %v1619_v40 = vrot.slane %v1611_v32, %v6112_v31  ;;  %v1626_v41 = vrot.slane %v1612_v33, %v6112_v31  ;;  %v1635_v42 = vrot.slane %v1627_v34, %v6112_v31  ;;  %v1642_v43 = vrot.slane %v1628_v36, %v6112_v31 }
 0x38d   : > { %v6155_v44 = vrot.slane %v1347_v37, %v6109_v24  ;;  %v6158_v45 = vrot.slane %v4534_v38, %v6109_v24  ;;  %v6161_v46 = vrot.slane %v1363_v15, %v6109_v24  ;;  %v6164_v47 = vrot.slane %v4535_v39, %v6109_v24  ;;  %v1208_v52 = vpop.permute.xlu1 %1207 }
 0x38e   : > { %v1715_v48 = vcombine.low %v1619_v40, %v1626_v41  ;;  %v4540_v49 = vcombine.high %v1619_v40, %v1626_v41  ;;  %v1731_v50 = vcombine.low %v1635_v42, %v1642_v43  ;;  %v4541_v51 = vcombine.high %v1635_v42, %v1642_v43 }
 0x38f   : > { %v1379_v53 = vcombine.low %v6155_v44, %v6158_v45  ;;  %v1395_v54 = vcombine.low %v6161_v46, %v6164_v47  ;;  %v1295_v1 = vcombine.low %v1196_v30, %v1208_v52  ;;  %v1296_v3 = vcombine.high %v1196_v30, %v1208_v52 }
 0x390   : > { %v1722_v55 = vrot.slane %v1715_v48, %v6109_v24  ;;  %v1730_v56 = vrot.slane %v4540_v49, %v6109_v24  ;;  %v6173_v57 = vrot.slane %v1731_v50, %v6109_v24  ;;  %v1746_v58 = vrot.slane %v4541_v51, %v6109_v24 }
 0x391   : > { %v1287_v10 = vrot.slane %v1279_v22, %v6109_v24  ;;  %v1294_v11 = vrot.slane %v1280_v23, %v6109_v24  ;;  %v1303_v16 = vrot.slane %v1295_v1, %v6109_v24  ;;  %v1310_v17 = vrot.slane %v1296_v3, %v6109_v24 }
 0x392   : > { %v1747_v12 = vcombine.low %v1722_v55, %v1730_v56  ;;  %v1763_v14 = vcombine.low %v6173_v57, %v1746_v58  ;;  %v1687_v18 = vrot.slane %v1679_v6, %v6112_v31  ;;  %v1703_v19 = vrot.slane %v1695_v7, %v6112_v31 }
 0x393   : > { %v1387_v20 = vrot.slane %v1379_v53, %v6112_v31  ;;  %v1403_v21 = vrot.slane %v1395_v54, %v6112_v31  ;;  %v1311_v23 = vcombine.low %v1287_v10, %v1303_v16  ;;  %v1312_v26 = vcombine.high %v1287_v10, %v1303_v16 }
 0x394   : > { %v6190_v25 = vrot.slane %v1747_v12, %v6112_v31  ;;  %v6193_v22 = vrot.slane %v1763_v14, %v6112_v31  ;;  %v1327_v27 = vcombine.low %v1294_v11, %v1310_v17  ;;  %v1328_v28 = vcombine.high %v1294_v11, %v1310_v17 }
 0x395   : > { %v1711_v29 = vcombine.low %v1687_v18, %v1703_v19  ;;  %v1319_v30 = vrot.slane %v1311_v23, %v6112_v31  ;;  %v1326_v32 = vrot.slane %v1312_v26, %v6112_v31  ;;  %v1411_v37 = vcombine.low %v1387_v20, %v1403_v21 }
 0x396   : > { %v1779_v13 = vcombine.low %v6190_v25, %v6193_v22  ;;  %v1335_v33 = vrot.slane %v1327_v27, %v6112_v31  ;;  %v1342_v34 = vrot.slane %v1328_v28, %v6112_v31  ;;  %v1712_v38 = vcombine.high %v1687_v18, %v1703_v19 }
 0x397   : > { %v1783_v36 = vpack.c.bf16 %v1711_v29, %v1711_v29  ;;  %v1415_v39 = vcombine.low %v1319_v30, %v1326_v32  ;;  %v4536_v40 = vcombine.high %v1319_v30, %v1326_v32  ;;  %v1680_v49 = vcombine.high %v6123_v63, %v6126_v0 }
 0x398   : > { %v1787_v15 = vpack.c.bf16 %v1779_v13, %v1779_v13  ;;  %v1431_v41 = vcombine.low %v1335_v33, %v1342_v34  ;;  %v4537_v42 = vcombine.high %v1335_v33, %v1342_v34  ;;  %v1696_v54 = vcombine.high %v6131_v4, %v6134_v5 }
 0x399   : > { %v2097_v43 = vsel %vm2092_vm1, %v1783_v36, 0  ;;  %v1422_v50 = vrot.slane %v1415_v39, %v6109_v24  ;;  %v1430_v51 = vrot.slane %v4536_v40, %v6109_v24  ;;  %v1748_v1 = vcombine.high %v1722_v55, %v1730_v56 }
 0x39a   : > { %v2281_v48 = vsel %vm2092_vm1, %v1787_v15, 0  ;;  %v1438_v52 = vrot.slane %v1431_v41, %v6109_v24  ;;  %v1446_v53 = vrot.slane %v4537_v42, %v6109_v24  ;;  %4790 = vmatpush3.bf16.xpose.msra.mxu1 %v2097_v43  ;;  %v1483_v7 = vpack.c.bf16 %v1411_v37, %v1411_v37 }
 0x39b   : > { %4795 = vmatprep.subr.bf16.mxu1 %v5543_v9  ;;  %4814 = vmatpush3.bf16.xpose.msra.mxu0 %v2281_v48  ;;  %v1447_v3 = vcombine.low %v1422_v50, %v1430_v51  ;;  %v1784_v63 = vpack.c.bf16 %v1712_v38, %v1712_v38  ;;  %v1694_v0 = vrot.slane %v1680_v49, %v6112_v31 }
 0x39c   : > { %v1463_v6 = vcombine.low %v1438_v52, %v1446_v53  ;;  %4825 = vmatprep.subr.bf16.mxu0 %v5543_v9  ;;  %v1710_v10 = vrot.slane %v1696_v54, %v6112_v31  ;;  %v1762_v11 = vrot.slane %v1748_v1, %v6112_v31  ;;  %v1764_v12 = vcombine.high %v6173_v57, %v1746_v58 }
 0x39d   : > { %v1455_v14 = vrot.slane %v1447_v3, %v6112_v31  ;;  %v1448_v4 = vcombine.high %v1422_v50, %v1430_v51  ;;  %v1464_v5 = vcombine.high %v1438_v52, %v1446_v53  ;;  %v2143_v17 = vsel %vm2092_vm1, %v1784_v63, 0  ;;  %v2091_v51 = vld [vmem:[%s6822_s23] sm:$0xff] }
 0x39e   : > { %v1471_v16 = vrot.slane %v1463_v6, %v6112_v31  ;;  %v1778_v55 = vrot.slane %v1764_v12, %v6112_v31  ;;  %v1713_v18 = vcombine.low %v1694_v0, %v1710_v10  ;;  %v1380_v23 = vcombine.high %v6155_v44, %v6158_v45 }
 0x39f   : > { %v1396_v57 = vcombine.high %v6161_v46, %v6164_v47  ;;  %v1412_v26 = vcombine.high %v1387_v20, %v1403_v21  ;;  %v1462_v28 = vrot.slane %v1448_v4, %v6112_v31  ;;  %v1478_v29 = vrot.slane %v1464_v5, %v6112_v31 }
 0x3a0   : > { %v1479_v56 = vcombine.low %v1455_v14, %v1471_v16  ;;  %v1781_v19 = vcombine.low %v1762_v11, %v1778_v55  ;;  %v1785_v13 = vpack.c.bf16 %v1713_v18, %v1713_v18  ;;  %v1394_v46 = vrot.slane %v1380_v23, %v6112_v31 }
 0x3a1   : > { %4792 = vmatmul.mubr.msk.bf16.vlgmr.msra.gmra.mrb[4].mxu1 %vm2092_vm1, %v1483_v7  ;;  %v1484_v45 = vpack.c.bf16 %v1412_v26, %v1412_v26  ;;  %v1410_v47 = vrot.slane %v1396_v57, %v6112_v31  ;;  %v1481_v20 = vcombine.low %v1462_v28, %v1478_v29  ;;  %v1714_v30 = vcombine.high %v1694_v0, %v1710_v10 }
 0x3a2   : > { %4796 = vmatpush3.bf16.xpose.msra.mxu1 %v2143_v17  ;;  %4797 = vmatprep.mubr.msk.bf16.mxu1 %vm5545_vm0, %v5543_v9  ;;  %v1487_v58 = vpack.c.bf16 %v1479_v56, %v1479_v56  ;;  %v1789_v27 = vpack.c.bf16 %v1781_v19, %v1781_v19  ;;  %v2189_v21 = vsel %vm2092_vm1, %v1785_v13, 0  ;;  %v1780_v38 = vcombine.high %v6190_v25, %v6193_v22 }
 0x3a3   : > { %4801 = vmatprep.subr.bf16.mxu1 %v5543_v9  ;;  %v1413_v32 = vcombine.low %v1394_v46, %v1410_v47  ;;  %v1489_v33 = vpack.c.bf16 %v1481_v20, %v1481_v20  ;;  %v1786_v34 = vpack.c.bf16 %v1714_v30, %v1714_v30  ;;  %v1414_v15 = vcombine.high %v1394_v46, %v1410_v47 }
 0x3a4   : > { %4816 = vmatmul.mubr.msk.bf16.vlgmr.msra.gmra.mrb[4].mxu0 %vm2092_vm1, %v1487_v58  ;;  %v2373_v44 = vsel %vm2092_vm1, %v1789_v27, 0  ;;  %v1788_v39 = vpack.c.bf16 %v1780_v38, %v1780_v38  ;;  %v1782_v42 = vcombine.high %v1762_v11, %v1778_v55  ;;  %v1480_v43 = vcombine.high %v1455_v14, %v1471_v16 }
 0x3a5   : > { %4827 = vmatprep.mubr.msk.bf16.mxu0 %vm5545_vm0, %v5543_v9  ;;  %4826 = vmatpush3.bf16.xpose.msra.mxu0 %v2373_v44  ;;  %v1485_v36 = vpack.c.bf16 %v1413_v32, %v1413_v32  ;;  %v2235_v37 = vsel %vm2092_vm1, %v1786_v34, 0  ;;  %v1486_v40 = vpack.c.bf16 %v1414_v15, %v1414_v15  ;;  %v1482_v49 = vcombine.high %v1462_v28, %v1478_v29 }
 0x3a6   : > { %4837 = vmatprep.subr.bf16.mxu0 %v5543_v9  ;;  %v2327_v41 = vsel %vm2092_vm1, %v1788_v39, 0  ;;  %v1790_v25 = vpack.c.bf16 %v1782_v42, %v1782_v42  ;;  %v1488_v22 = vpack.c.bf16 %v1480_v43, %v1480_v43  ;;  %v972_v13 = vsub.s32 2, %v6069_v59 }
 0x3a7   : > { %v1490_v50 = vpack.c.bf16 %v1482_v49, %v1482_v49 }
 0x3a8   : > { %v2419_v48 = vsel %vm2092_vm1, %v1790_v25, 0  ;;  %v973_v46 = vrot.slane %v6074_v62, %v972_v13 }
 0x3a9   : > { %4798 = vmatmul.mubr.msk.bf16.vlgmr.msra.gmra.mrb[8].mxu1 %vm2092_vm1, %v1484_v45 }
 0x3aa   : > { %4802 = vmatpush3.bf16.xpose.msra.mxu1 %v2189_v21  ;;  %4803 = vmatprep.mubr.msk.bf16.mxu1 %vm5545_vm0, %v5543_v9  ;;  %v6285_v32 = vadd.f32 %v6082_v2, %v973_v46 }
 0x3ab   : > { %4807 = vmatprep.subr.bf16.mxu1 %v5543_v9 }
 0x3ac   : > { %4828 = vmatmul.mubr.msk.bf16.vlgmr.msra.gmra.mrb[8].mxu0 %vm2092_vm1, %v1489_v33 }
 0x3ad   : > { %4839 = vmatprep.mubr.msk.bf16.mxu0 %vm5545_vm0, %v5543_v9 }
 0x3b1   : > { %4804 = vmatmul.mubr.msk.bf16.vlgmr.msra.gmra.mrb[12].mxu1 %vm2092_vm1, %v1485_v36 }
 0x3b2   : > { %4808 = vmatpush3.bf16.xpose.msra.mxu1 %v2235_v37  ;;  %4809 = vmatprep.mubr.msk.bf16.mxu1 %vm5545_vm0, %v5543_v9 }
 0x3b3   : > { %4819 = vmatprep.subr.bf16.mxu1 %v5543_v9 }
 0x3b9   : > { %4810 = vmatmul.mubr.msk.bf16.vlgmr.msra.gmra.mrb[16].mxu1 %vm2092_vm1, %v1486_v40 }
 0x3ba   : > { %4820 = vmatpush3.bf16.xpose.msra.mxu1 %v2327_v41  ;;  %4821 = vmatprep.mubr.msk.bf16.mxu1 %vm5545_vm0, %v5543_v9 }
 0x3bb   : > { %4831 = vmatprep.subr.bf16.mxu1 %v5543_v9 }
 0x3c1   : > { %4822 = vmatmul.mubr.msk.bf16.vlgmr.msra.gmra.mrb[20].mxu1 %vm2092_vm1, %v1488_v22  ;;  %v6303_v22 = vadd.f32 %v6084_v8, %v973_v46 }
 0x3c2   : > { %4832 = vmatpush3.bf16.xpose.msra.mxu1 %v2419_v48  ;;  %4833 = vmatprep.mubr.msk.bf16.mxu1 %vm5545_vm0, %v5543_v9 }
 0x3c3   : > { %4843 = vmatprep.subr.bf16.mxu1 %v5543_v9 }
 0x3c9   : > { %4834 = vmatmul.mubr.msk.bf16.vlgmr.msra.gmra.mrb[24].mxu1 %vm2092_vm1, %v1490_v50 }
 0x3ca   : > { %4845 = vmatprep.mubr.msk.bf16.mxu1 %vm5545_vm0, %v5543_v9 }
 0x474   : > { %v2133_v52 = vpop.f32.mrb[4].mxu1 }
 0x475   : > { %v6269_v53 = vadd.f32 %v2133_v52, %v2091_v51  ;;  %v4793_v54 = vpop.f32.mrb[5].mxu1 }
 0x476   : > { %v2136_v1 = vpop.f32.mrb[6].mxu1 }
 0x477   : > { %v4794_v3 = vpop.f32.mrb[7].mxu1  ;;  %v2462_v6 = vsel %vm2461_vm2, %v6269_v53, -inf  ;;  %v2317_v7 = vpop.f32.mrb[4].mxu0 }
 0x478   : > { %2463 = vmax.xlane.f32.xlu0 %v2462_v6  ;;  %v2318_v63 = vadd.f32 %v2317_v7, %v2091_v51  ;;  %v4817_v0 = vpop.f32.mrb[5].mxu0 }
 0x479   : > { %v2320_v10 = vpop.f32.mrb[6].mxu0 }
 0x47a   : > { %v4818_v11 = vpop.f32.mrb[7].mxu0  ;;  %v2474_v12 = vsel %vm2461_vm2, %v2318_v63, -inf }
 0x47c   : > { %v2179_v14 = vpop.f32.mrb[8].mxu1  ;;  %2475 = vmax.xlane.f32.xlu0 %v2474_v12 }
 0x47d   : > { %v2180_v16 = vadd.f32 %v2179_v14, %v2091_v51  ;;  %v4799_v4 = vpop.f32.mrb[9].mxu1 }
 0x47e   : > { %v2182_v5 = vpop.f32.mrb[10].mxu1 }
 0x47f   : > { %v4800_v55 = vpop.f32.mrb[11].mxu1  ;;  %v2465_v56 = vsel %vm2461_vm2, %v2180_v16, -inf  ;;  %v2409_v17 = vpop.f32.mrb[8].mxu0 }
 0x480   : > { %2466 = vmax.xlane.f32.xlu1 %v2465_v56  ;;  %v6275_v18 = vadd.f32 %v2409_v17, %v2091_v51  ;;  %v4829_v19 = vpop.f32.mrb[9].mxu0 }
 0x481   : > { %v2412_v23 = vpop.f32.mrb[10].mxu0 }
 0x482   : > { %v4830_v57 = vpop.f32.mrb[11].mxu0  ;;  %v2480_v58 = vsel %vm2461_vm2, %v6275_v18, -inf }
 0x483   : > { %2481 = vmax.xlane.f32.xlu0 %v2480_v58 }
 0x484   : > { %v2225_v26 = vpop.f32.mrb[12].mxu1 }
 0x485   : > { %v2226_v27 = vadd.f32 %v2225_v26, %v2091_v51  ;;  %v4805_v28 = vpop.f32.mrb[13].mxu1 }
 0x486   : > { %v2228_v29 = vpop.f32.mrb[14].mxu1 }
 0x487   : > { %v4806_v44 = vpop.f32.mrb[15].mxu1  ;;  %v2468_v45 = vsel %vm2461_vm2, %v2226_v27, -inf }
 0x488   : > { %2469 = vmax.xlane.f32.xlu0 %v2468_v45 }
 0x48c   : > { %v2271_v47 = vpop.f32.mrb[16].mxu1 }
 0x48d   : > { %v2272_v20 = vadd.f32 %v2271_v47, %v2091_v51  ;;  %v4811_v21 = vpop.f32.mrb[17].mxu1 }
 0x48e   : > { %v2274_v30 = vpop.f32.mrb[18].mxu1 }
 0x48f   : > { %v4812_v33 = vpop.f32.mrb[19].mxu1  ;;  %v2471_v34 = vsel %vm2461_vm2, %v2272_v20, -inf }
 0x490   : > { %2472 = vmax.xlane.f32.xlu0 %v2471_v34 }
 0x491   : > { %1799 = vrot.lane.b32.xlu1 %v6285_v32, %s5546_s20 }
 0x494   : > { %v2363_v36 = vpop.f32.mrb[20].mxu1 }
 0x495   : > { %v6290_v37 = vadd.f32 %v2363_v36, %v2091_v51  ;;  %1805 = vrot.lane.b32.xlu1 %v6285_v32, %s5548_s24  ;;  %v4823_v62 = vpop.f32.mrb[21].mxu1 }
 0x496   : > { %v2366_v38 = vpop.f32.mrb[22].mxu1 }
 0x497   : > { %v4824_v15 = vpop.f32.mrb[23].mxu1  ;;  %v2477_v43 = vsel %vm2461_vm2, %v6290_v37, -inf }
 0x49c   : > { %v2455_v39 = vpop.f32.mrb[24].mxu1 }
 0x49d   : > { %v6294_v40 = vadd.f32 %v2455_v39, %v2091_v51  ;;  %v4835_v2 = vpop.f32.mrb[25].mxu1 }
 0x49e   : > { %v2458_v41 = vpop.f32.mrb[26].mxu1 }
 0x49f   : > { %v4836_v42 = vpop.f32.mrb[27].mxu1  ;;  %v2483_v25 = vsel %vm2461_vm2, %v6294_v40, -inf }
 0x4a6   : > { %1793 = vrot.lane.b32.xlu0 %v6285_v32, %s5547_s7 }
 0x4b9   : > { %2478 = vmax.xlane.f32.xlu1 %v2477_v43 }
 0x4bd   : > { %2484 = vmax.xlane.f32.xlu1 %v2483_v25 }
 0x4ce   : > { %1795 = vrot.lane.b32.xlu1 %v6303_v22, %s5547_s7 }
 0x505   : > { %v2464_v48 = vpop.xlane.xlu0 %2463 }
 0x506   : > { %v2486_v49 = vsub.f32 %v6269_v53, %v2464_v48 }
 0x508   : > { %v2494_v50 = vmul.f32 1.442695, %v2486_v49 }
 0x509   : > { %v2476_v51 = vpop.xlane.xlu0 %2475 }
 0x50a   : > { %5202 = vpow2.f32 %v2494_v50  ;;  %v2490_v52 = vsub.f32 %v2318_v63, %v2476_v51 }
 0x50c   : > { %v2502_v54 = vmul.f32 1.442695, %v2490_v52 }
 0x50d   : > { %v2467_v1 = vpop.xlane.xlu1 %2466 }
 0x50e   : > { %v2487_v3 = vsub.f32 %v2180_v16, %v2467_v1  ;;  %5204 = vpow2.f32 %v2502_v54 }
 0x510   : > { %v2496_v6 = vmul.f32 1.442695, %v2487_v3  ;;  %v6308_v7 = vpop.xlane.xlu0 %2481 }
 0x511   : > { %v1800_v14 = vpop.permute.xlu1 %1799 }
 0x512   : > { %5206 = vpow2.f32 %v2496_v6  ;;  %v1811_v56 = vcombine.low %v6285_v32, %v1800_v14  ;;  %v1812_v17 = vcombine.high %v6285_v32, %v1800_v14 }
 0x514   : > { %v6310_v8 = vpop.eup %5202  ;;  %v1819_v28 = vrot.slane %v1811_v56, %v6109_v24  ;;  %v1826_v29 = vrot.slane %v1812_v17, %v6109_v24 }
 0x515   : > { %v2510_v0 = vsel %vm2461_vm2, %v6310_v8, 0.0  ;;  %v2470_v10 = vpop.xlane.xlu0 %2469  ;;  %v1806_v23 = vpop.permute.xlu1 %1805 }
 0x516   : > { %2511 = vadd.xlane.f32.xlu0 %v2510_v0  ;;  %v2488_v53 = vsub.f32 %v2226_v27, %v2470_v10 }
 0x518   : > { %v6314_v11 = vpop.eup %5204  ;;  %v2498_v12 = vmul.f32 1.442695, %v2488_v53 }
 0x519   : > { %v2522_v63 = vsel %vm2461_vm2, %v6314_v11, 0.0 }
 0x51a   : > { %5208 = vpow2.f32 %v2498_v12  ;;  %2523 = vadd.xlane.f32.xlu0 %v2522_v63 }
 0x51c   : > { %v6318_v16 = vpop.eup %5206 }
 0x51d   : > { %v2513_v4 = vsel %vm2461_vm2, %v6318_v16, 0.0  ;;  %v2473_v5 = vpop.xlane.xlu0 %2472 }
 0x51e   : > { %2514 = vadd.xlane.f32.xlu1 %v2513_v4  ;;  %v2489_v55 = vsub.f32 %v2272_v20, %v2473_v5 }
 0x520   : > { %v2500_v19 = vmul.f32 1.442695, %v2489_v55  ;;  %v2492_v55 = vsub.f32 %v6275_v18, %v6308_v7 }
 0x521   : > { %v1794_v57 = vpop.permute.xlu0 %1793 }
 0x522   : > { %5210 = vpow2.f32 %v2500_v19  ;;  %v1827_v58 = vcombine.low %v1794_v57, %v1806_v23  ;;  %v1828_v26 = vcombine.high %v1794_v57, %v1806_v23  ;;  %v2506_v23 = vmul.f32 1.442695, %v2492_v55 }
 0x524   : > { %v6324_v27 = vpop.eup %5208  ;;  %v1835_v44 = vrot.slane %v1827_v58, %v6109_v24  ;;  %v1842_v45 = vrot.slane %v1828_v26, %v6109_v24 }
 0x525   : > { %v2516_v46 = vsel %vm2461_vm2, %v6324_v27, 0.0 }
 0x526   : > { %v1843_v47 = vcombine.low %v1819_v28, %v1835_v44  ;;  %v1844_v20 = vcombine.high %v1819_v28, %v1835_v44  ;;  %v1859_v21 = vcombine.low %v1826_v29, %v1842_v45  ;;  %v1860_v30 = vcombine.high %v1826_v29, %v1842_v45  ;;  %2517 = vadd.xlane.f32.xlu1 %v2516_v46 }
 0x528   : > { %v1851_v32 = vrot.slane %v1843_v47, %v6112_v31  ;;  %v1858_v33 = vrot.slane %v1844_v20, %v6112_v31  ;;  %v1867_v34 = vrot.slane %v1859_v21, %v6112_v31  ;;  %v1874_v36 = vrot.slane %v1860_v30, %v6112_v31 }
 0x52a   : > { %v1947_v62 = vcombine.low %v1851_v32, %v1858_v33  ;;  %v4542_v38 = vcombine.high %v1851_v32, %v1858_v33  ;;  %v1963_v15 = vcombine.low %v1867_v34, %v1874_v36  ;;  %v4543_v39 = vcombine.high %v1867_v34, %v1874_v36 }
 0x52c   : > { %v6336_v2 = vpop.eup %5210  ;;  %v1954_v41 = vrot.slane %v1947_v62, %v6109_v24  ;;  %v1962_v42 = vrot.slane %v4542_v38, %v6109_v24  ;;  %v1970_v43 = vrot.slane %v1963_v15, %v6109_v24  ;;  %v1978_v25 = vrot.slane %v4543_v39, %v6109_v24 }
 0x52d   : > { %v2519_v48 = vsel %vm2461_vm2, %v6336_v2, 0.0 }
 0x52e   : > { %2520 = vadd.xlane.f32.xlu0 %v2519_v48  ;;  %v1979_v49 = vcombine.low %v1954_v41, %v1962_v42  ;;  %v1995_v50 = vcombine.low %v1970_v43, %v1978_v25  ;;  %v1980_v51 = vcombine.high %v1954_v41, %v1962_v42  ;;  %v1996_v52 = vcombine.high %v1970_v43, %v1978_v25 }
 0x530   : > { %v1987_v54 = vrot.slane %v1979_v49, %v6112_v31  ;;  %v2003_v1 = vrot.slane %v1995_v50, %v6112_v31  ;;  %v1994_v3 = vrot.slane %v1980_v51, %v6112_v31  ;;  %v2010_v6 = vrot.slane %v1996_v52, %v6112_v31 }
 0x532   : > { %v2011_v0 = vcombine.low %v1987_v54, %v2003_v1  ;;  %v2012_v10 = vcombine.high %v1987_v54, %v2003_v1  ;;  %v2013_v53 = vcombine.low %v1994_v3, %v2010_v6  ;;  %v2014_v12 = vcombine.high %v1994_v3, %v2010_v6 }
 0x534   : > { %v2083_v63 = vpack.c.bf16 %v2011_v0, %v2011_v0  ;;  %v2084_v14 = vpack.c.bf16 %v2012_v10, %v2012_v10  ;;  %v2085_v30 = vpack.c.bf16 %v2013_v53, %v2013_v53  ;;  %v2086_v38 = vpack.c.bf16 %v2014_v12, %v2014_v12 }
 0x536   : > { %v2563_v4 = vsel %vm2561_vm3, %v2083_v63, 0  ;;  %v2609_v5 = vsel %vm2561_vm3, %v2084_v14, 0  ;;  %v2701_v15 = vsel %vm2561_vm3, %v2086_v38, 0 }
 0x537   : > { %4838 = vmatpush3.bf16.msra.mxu0 %v2563_v4  ;;  %4844 = vmatpush3.bf16.msra.mxu1 %v2609_v5 }
 0x538   : > { %1807 = vrot.lane.b32.xlu1 %v6303_v22, %s5548_s24  ;;  %4849 = vmatprep.subr.bf16.mxu0 %v5543_v9 }
 0x539   : > { %4855 = vmatprep.subr.bf16.mxu1 %v5543_v9 }
 0x546   : > { %v2479_v56 = vpop.xlane.xlu1 %2478 }
 0x547   : > { %v2491_v17 = vsub.f32 %v6290_v37, %v2479_v56 }
 0x549   : > { %v2504_v19 = vmul.f32 1.442695, %v2491_v17 }
 0x54a   : > { %v2485_v18 = vpop.xlane.xlu1 %2484 }
 0x54b   : > { %5212 = vpow2.f32 %v2504_v19  ;;  %v2493_v37 = vsub.f32 %v6294_v40, %v2485_v18  ;;  %v2655_v40 = vsel %vm2561_vm3, %v2085_v30, 0 }
 0x54c   : > { %5214 = vpow2.f32 %v2506_v23 }
 0x54d   : > { %v2508_v7 = vmul.f32 1.442695, %v2493_v37 }
 0x54e   : > { %v1796_v46 = vpop.permute.xlu1 %1795 }
 0x54f   : > { %5216 = vpow2.f32 %v2508_v7 }
 0x555   : > { %v6357_v57 = vpop.eup %5212 }
 0x556   : > { %v2525_v58 = vsel %vm2461_vm2, %v6357_v57, 0.0  ;;  %v6361_v26 = vpop.eup %5214 }
 0x557   : > { %2526 = vadd.xlane.f32.xlu0 %v2525_v58  ;;  %v2528_v28 = vsel %vm2461_vm2, %v6361_v26, 0.0 }
 0x559   : > { %v6368_v29 = vpop.eup %5216 }
 0x55a   : > { %v2531_v44 = vsel %vm2461_vm2, %v6368_v29, 0.0 }
 0x55c   : > { %2529 = vadd.xlane.f32.xlu1 %v2528_v28 }
 0x56d   : > { %1801 = vrot.lane.b32.xlu0 %v6303_v22, %s5546_s20 }
 0x58c   : > { %2532 = vadd.xlane.f32.xlu0 %v2531_v44 }
 0x5a3   : > { %v2512_v45 = vpop.xlane.xlu0 %2511 }
 0x5a4   : > { %5218 = vrcp.f32 %v2512_v45 }
 0x5a7   : > { %v2524_v62 = vpop.xlane.xlu0 %2523 }
 0x5ab   : > { %v2515_v47 = vpop.xlane.xlu1 %2514 }
 0x5ac   : > { %5220 = vrcp.f32 %v2515_v47 }
 0x5ae   : > { %v5219_v20 = vpop.eup %5218 }
 0x5af   : > { %v2535_v21 = vmul.f32 %v5219_v20, %v6310_v8 }
 0x5b1   : > { %v2550_v32 = vpack.c.bf16 %v2535_v21, %v2535_v21 }
 0x5b3   : > { %4840 = vmatmul.mubr.msk.bf16.vlgmr.msra.gmra.mrb[12].mxu0 %vm2461_vm2, %v2550_v32  ;;  %v2518_v33 = vpop.xlane.xlu1 %2517 }
 0x5b4   : > { %4850 = vmatpush3.bf16.msra.mxu0 %v2655_v40  ;;  %5222 = vrcp.f32 %v2518_v33  ;;  %4851 = vmatprep.mubr.msk.bf16.mxu0 %vm5545_vm0, %v5543_v9 }
 0x5b5   : > { %4861 = vmatprep.subr.bf16.mxu0 %v5543_v9 }
 0x5b6   : > { %v5221_v34 = vpop.eup %5220 }
 0x5b7   : > { %v2537_v36 = vmul.f32 %v5221_v34, %v6318_v16  ;;  %v1808_v49 = vpop.permute.xlu1 %1807 }
 0x5b8   : > { %v1895_v51 = vcombine.low %v1796_v46, %v1808_v49  ;;  %v1896_v52 = vcombine.high %v1796_v46, %v1808_v49 }
 0x5b9   : > { %v2551_v8 = vpack.c.bf16 %v2537_v36, %v2537_v36 }
 0x5ba   : > { %v1903_v3 = vrot.slane %v1895_v51, %v6109_v24  ;;  %v1910_v6 = vrot.slane %v1896_v52, %v6109_v24 }
 0x5bb   : > { %4846 = vmatmul.mubr.msk.bf16.vlgmr.msra.gmra.mrb[28].mxu1 %vm2461_vm2, %v2551_v8  ;;  %v2521_v39 = vpop.xlane.xlu0 %2520 }
 0x5bc   : > { %4856 = vmatpush3.bf16.msra.mxu1 %v2701_v15  ;;  %5224 = vrcp.f32 %v2521_v39  ;;  %4857 = vmatprep.mubr.msk.bf16.mxu1 %vm5545_vm0, %v5543_v9 }
 0x5bd   : > { %4867 = vmatprep.subr.bf16.mxu1 %v5543_v9  ;;  %5226 = vrcp.f32 %v2524_v62 }
 0x5be   : > { %v5223_v41 = vpop.eup %5222 }
 0x5bf   : > { %v2539_v42 = vmul.f32 %v5223_v41, %v6324_v27 }
 0x5c1   : > { %v2552_v43 = vpack.c.bf16 %v2539_v42, %v2539_v42 }
 0x5c3   : > { %4852 = vmatmul.mubr.msk.bf16.vlgmr.msra.gmra.mrb[16].mxu0 %vm2461_vm2, %v2552_v43 }
 0x5c4   : > { %4863 = vmatprep.mubr.msk.bf16.mxu0 %vm5545_vm0, %v5543_v9 }
 0x5c6   : > { %v5225_v16 = vpop.eup %5224 }
 0x5c7   : > { %v2541_v25 = vmul.f32 %v5225_v16, %v6336_v2  ;;  %v5227_v46 = vpop.eup %5226 }
 0x5c8   : > { %v2543_v38 = vmul.f32 %v5227_v46, %v6314_v11 }
 0x5c9   : > { %v2553_v48 = vpack.c.bf16 %v2541_v25, %v2541_v25 }
 0x5ca   : > { %v2554_v25 = vpack.c.bf16 %v2543_v38, %v2543_v38 }
 0x5cb   : > { %4858 = vmatmul.mubr.msk.bf16.vlgmr.msra.gmra.mrb[32].mxu1 %vm2461_vm2, %v2553_v48 }
 0x5cc   : > { %4869 = vmatprep.mubr.msk.bf16.mxu1 %vm5545_vm0, %v5543_v9 }
 0x5e4   : > { %v2527_v50 = vpop.xlane.xlu0 %2526 }
 0x5e5   : > { %5228 = vrcp.f32 %v2527_v50 }
 0x5e8   : > { %v1802_v27 = vpop.permute.xlu0 %1801 }
 0x5e9   : > { %v1879_v54 = vcombine.low %v6303_v22, %v1802_v27  ;;  %v1880_v1 = vcombine.high %v6303_v22, %v1802_v27  ;;  %v2530_v37 = vpop.xlane.xlu1 %2529 }
 0x5ea   : > { %5230 = vrcp.f32 %v2530_v37 }
 0x5eb   : > { %v1887_v2 = vrot.slane %v1879_v54, %v6109_v24  ;;  %v1894_v0 = vrot.slane %v1880_v1, %v6109_v24 }
 0x5ed   : > { %v1911_v10 = vcombine.low %v1887_v2, %v1903_v3  ;;  %v1912_v53 = vcombine.high %v1887_v2, %v1903_v3  ;;  %v1927_v12 = vcombine.low %v1894_v0, %v1910_v6  ;;  %v1928_v63 = vcombine.high %v1894_v0, %v1910_v6 }
 0x5ef   : > { %v1919_v14 = vrot.slane %v1911_v10, %v6112_v31  ;;  %v1926_v4 = vrot.slane %v1912_v53, %v6112_v31  ;;  %v1935_v22 = vrot.slane %v1927_v12, %v6112_v31  ;;  %v1942_v5 = vrot.slane %v1928_v63, %v6112_v31  ;;  %v5229_v32 = vpop.eup %5228  ;;  %v5110_v63 = vld [vmem:[%s5936_s11] sm:$0xff]  }
 0x5f0   : > { %v2545_v8 = vmul.f32 %v5229_v32, %v6357_v57 }
 0x5f1   : > { %v2015_v55 = vcombine.low %v1919_v14, %v1926_v4  ;;  %v4544_v56 = vcombine.high %v1919_v14, %v1926_v4  ;;  %v2031_v17 = vcombine.low %v1935_v22, %v1942_v5  ;;  %v4545_v19 = vcombine.high %v1935_v22, %v1942_v5  ;;  %v5111_v5 = vld [vmem:[%s5936_s11 + $0x8] sm:$0xff]  }
 0x5f2   : > { %v2555_v48 = vpack.c.bf16 %v2545_v8, %v2545_v8 }
 0x5f3   : > { %v2022_v23 = vrot.slane %v2015_v55, %v6109_v24  ;;  %v2030_v58 = vrot.slane %v4544_v56, %v6109_v24  ;;  %v2038_v28 = vrot.slane %v2031_v17, %v6109_v24  ;;  %v2046_v18 = vrot.slane %v4545_v19, %v6109_v24  ;;  %v5112_v17 = vld [vmem:[%s5936_s11 + $0x10] sm:$0xff]  }
 0x5f4   : > { %v5231_v49 = vpop.eup %5230 }
 0x5f5   : > { %v2047_v7 = vcombine.low %v2022_v23, %v2030_v58  ;;  %v2063_v44 = vcombine.low %v2038_v28, %v2046_v18  ;;  %v2048_v45 = vcombine.high %v2022_v23, %v2030_v58  ;;  %v2064_v47 = vcombine.high %v2038_v28, %v2046_v18  ;;  %v5113_v18 = vld [vmem:[%s5936_s11 + $0x18] sm:$0xff]  }
 0x5f6   : > { %v2547_v50 = vmul.f32 %v5231_v49, %v6361_v26 }
 0x5f7   : > { %v2055_v20 = vrot.slane %v2047_v7, %v6112_v31  ;;  %v2071_v21 = vrot.slane %v2063_v44, %v6112_v31  ;;  %v2062_v30 = vrot.slane %v2048_v45, %v6112_v31  ;;  %v2078_v40 = vrot.slane %v2064_v47, %v6112_v31 }
 0x5f8   : > { %v2556_v51 = vpack.c.bf16 %v2547_v50, %v2547_v50 }
 0x5f9   : > { %v2079_v33 = vcombine.low %v2055_v20, %v2071_v21  ;;  %v2080_v34 = vcombine.high %v2055_v20, %v2071_v21  ;;  %v2081_v36 = vcombine.low %v2062_v30, %v2078_v40  ;;  %v2082_v62 = vcombine.high %v2062_v30, %v2078_v40  ;;  %v5114_v40 = vld [vmem:[%s5936_s11 + $0x20] sm:$0xff]  }
 0x5fb   : > { %v2087_v15 = vpack.c.bf16 %v2079_v33, %v2079_v33  ;;  %v2088_v39 = vpack.c.bf16 %v2080_v34, %v2080_v34  ;;  %v2089_v43 = vpack.c.bf16 %v2081_v36, %v2081_v36  ;;  %v2090_v16 = vpack.c.bf16 %v2082_v62, %v2082_v62 }
 0x5fd   : > { %v2747_v41 = vsel %vm2561_vm3, %v2087_v15, 0  ;;  %v2793_v42 = vsel %vm2561_vm3, %v2088_v39, 0  ;;  %v2839_v11 = vsel %vm2561_vm3, %v2089_v43, 0  ;;  %v2885_v57 = vsel %vm2561_vm3, %v2090_v16, 0 }
 0x5fe   : > { %4862 = vmatpush3.bf16.msra.mxu0 %v2747_v41  ;;  %4868 = vmatpush3.bf16.msra.mxu1 %v2793_v42  ;;  %v5115_v41 = vld [vmem:[%s5936_s11 + $0x28] sm:$0xff]  }
 0x5ff   : > { %4873 = vmatprep.subr.bf16.mxu0 %v5543_v9  ;;  %4879 = vmatprep.subr.bf16.mxu1 %v5543_v9 }
 0x601   : > { %4864 = vmatmul.mubr.msk.bf16.vlgmr.msra.gmra.mrb[20].mxu0 %vm2461_vm2, %v2554_v25  ;;  %4870 = vmatmul.mubr.msk.bf16.vlgmr.msra.gmra.mrb[36].mxu1 %vm2461_vm2, %v2555_v48 }
 0x602   : > { %4874 = vmatpush3.bf16.msra.mxu0 %v2839_v11  ;;  %4880 = vmatpush3.bf16.msra.mxu1 %v2885_v57 }
 0x603   : > { %4875 = vmatprep.mubr.msk.bf16.mxu0 %vm5545_vm0, %v5543_v9  ;;  %4881 = vmatprep.mubr.msk.bf16.mxu1 %vm5545_vm0, %v5543_v9 }
 0x604   : > { %4885 = vmatprep.subr.bf16.mxu0 %v5543_v9 }
 0x609   : > { %4876 = vmatmul.mubr.msk.bf16.vlgmr.msra.gmra.mrb[24].mxu0 %vm2461_vm2, %v2556_v51 }
 0x60a   : > { %4901 = vmatprep.mubr.msk.bf16.mxu0 %vm5545_vm0, %v5543_v9  ;;  %4886 = vmatpush3.bf16.msra.mxu0 %v5110_v63 }
 0x60b   : > { %4887 = vmatprep.subr.bf16.mxu0 %v5543_v9 }
 0x60e   : > { %4888 = vmatpush3.bf16.msra.mxu0 %v5111_v5 }
 0x60f   : > { %4889 = vmatprep.subr.bf16.mxu0 %v5543_v9 }
 0x612   : > { %4890 = vmatpush3.bf16.msra.mxu0 %v5112_v17 }
 0x613   : > { %4891 = vmatprep.subr.bf16.mxu0 %v5543_v9 }
 0x616   : > { %4892 = vmatpush3.bf16.msra.mxu0 %v5113_v18 }
 0x617   : > { %4893 = vmatprep.subr.bf16.mxu0 %v5543_v9 }
 0x619   : > { %v2533_v52 = vpop.xlane.xlu0 %2532 }
 0x61a   : > { %5232 = vrcp.f32 %v2533_v52  ;;  %4894 = vmatpush3.bf16.msra.mxu0 %v5114_v40 }
 0x61b   : > { %4895 = vmatprep.subr.bf16.mxu0 %v5543_v9 }
 0x61e   : > { %4896 = vmatpush3.bf16.msra.mxu0 %v5115_v41 }
 0x61f   : > { %4897 = vmatprep.subr.bf16.mxu0 %v5543_v9 }
 0x624   : > { %v5233_v27 = vpop.eup %5232 }
 0x625   : > { %v2549_v26 = vmul.f32 %v5233_v27, %v6368_v29 }
 0x627   : > { %v2557_v54 = vpack.c.bf16 %v2549_v26, %v2549_v26 }
 0x629   : > { %4882 = vmatmul.mubr.msk.bf16.vlgmr.msra.gmra.mrb[40].mxu1 %vm2461_vm2, %v2557_v54 }
 0x62a   : > { %3633 = vmatprep.mubr.bf16.mxu1 %v5544_v35 }
 0x686   : > { %v2599_v1 = vpop.f32.mrb[12].mxu0 }
 0x687   : > { %v4841_v3 = vpop.f32.mrb[13].mxu0 }
 0x688   : > { %v2602_v6 = vpop.f32.mrb[14].mxu0 }
 0x689   : > { %v4842_v2 = vpop.f32.mrb[15].mxu0 }
 0x68e   : > { %v2645_v0 = vpop.f32.mrb[28].mxu1 }
 0x68f   : > { %v4847_v10 = vpop.f32.mrb[29].mxu1 }
 0x690   : > { %v2648_v53 = vpop.f32.mrb[30].mxu1 }
 0x691   : > { %v4848_v12 = vpop.f32.mrb[31].mxu1 }
 0x696   : > { %v2691_v14 = vpop.f32.mrb[16].mxu0 }
 0x697   : > { %v2927_v4 = vcombine.low %v2599_v1, %v2691_v14  ;;  %v2928_v29 = vcombine.high %v2599_v1, %v2691_v14  ;;  %v4853_v22 = vpop.f32.mrb[17].mxu0 }
 0x698   : > { %v2694_v55 = vpop.f32.mrb[18].mxu0 }
 0x699   : > { %v4854_v56 = vpop.f32.mrb[19].mxu0  ;;  %v2935_v7 = vrot.slane %v2927_v4, %v6109_v24  ;;  %v2942_v44 = vrot.slane %v2928_v29, %v6109_v24 }
 0x69e   : > { %v2737_v19 = vpop.f32.mrb[32].mxu1 }
 0x69f   : > { %v2943_v23 = vcombine.low %v2645_v0, %v2737_v19  ;;  %v2944_v58 = vcombine.high %v2645_v0, %v2737_v19  ;;  %v4859_v28 = vpop.f32.mrb[33].mxu1 }
 0x6a0   : > { %v2740_v37 = vpop.f32.mrb[34].mxu1 }
 0x6a1   : > { %v2951_v45 = vrot.slane %v2943_v23, %v6109_v24  ;;  %v2958_v46 = vrot.slane %v2944_v58, %v6109_v24  ;;  %v4860_v47 = vpop.f32.mrb[35].mxu1 }
 0x6a3   : > { %v2959_v20 = vcombine.low %v2935_v7, %v2951_v45  ;;  %v2960_v21 = vcombine.high %v2935_v7, %v2951_v45  ;;  %v2975_v30 = vcombine.low %v2942_v44, %v2958_v46  ;;  %v2976_v32 = vcombine.high %v2942_v44, %v2958_v46 }
 0x6a5   : > { %v2967_v33 = vrot.slane %v2959_v20, %v6112_v31  ;;  %v2974_v34 = vrot.slane %v2960_v21, %v6112_v31  ;;  %v2983_v36 = vrot.slane %v2975_v30, %v6112_v31  ;;  %v2990_v62 = vrot.slane %v2976_v32, %v6112_v31 }
 0x6a7   : > { %v3063_v38 = vcombine.low %v2967_v33, %v2974_v34  ;;  %v4562_v8 = vcombine.high %v2967_v33, %v2974_v34  ;;  %v3079_v15 = vcombine.low %v2983_v36, %v2990_v62  ;;  %v4563_v39 = vcombine.high %v2983_v36, %v2990_v62 }
 0x6a9   : > { %v3070_v42 = vrot.slane %v3063_v38, %v6109_v24  ;;  %v3078_v43 = vrot.slane %v4562_v8, %v6109_v24  ;;  %v3086_v16 = vrot.slane %v3079_v15, %v6109_v24  ;;  %v3094_v25 = vrot.slane %v4563_v39, %v6109_v24  ;;  %v5116_v8 = vld [vmem:[%s5936_s11 + $0x30] sm:$0xff]  }
 0x6aa   : > { %4898 = vmatpush3.bf16.msra.mxu0 %v5116_v8 }
 0x6ab   : > { %v3096_v48 = vcombine.high %v3070_v42, %v3078_v43  ;;  %v3112_v49 = vcombine.high %v3086_v16, %v3094_v25  ;;  %v3095_v11 = vcombine.low %v3070_v42, %v3078_v43  ;;  %v3111_v57 = vcombine.low %v3086_v16, %v3094_v25  ;;  %4899 = vmatprep.subr.bf16.mxu0 %v5543_v9 }
 0x6ad   : > { %v6457_v50 = vrot.slane %v3096_v48, %v6112_v31  ;;  %v6460_v51 = vrot.slane %v3112_v49, %v6112_v31  ;;  %v6463_v52 = vrot.slane %v3095_v11, %v6112_v31  ;;  %v6466_v27 = vrot.slane %v3111_v57, %v6112_v31 }
 0x6af   : > { %v3129_v26 = vcombine.low %v6457_v50, %v6460_v51  ;;  %v3127_v54 = vcombine.low %v6463_v52, %v6466_v27  ;;  %v3128_v1 = vcombine.high %v6463_v52, %v6466_v27  ;;  %v3130_v3 = vcombine.high %v6457_v50, %v6460_v51  ;;  %v5117_v51 = vld [vmem:[%s5936_s11 + $0x38] sm:$0xff]   ;;  %v4566_v52 = vld [vmem:[%s6824_s14] ss:$0 sm:$0xff] }
 0x6b0   : > { %4900 = vmatpush3.bf16.msra.mxu0 %v5117_v51  ;;  %v5144_v51 = vld [vmem:[%s5942_s25 + $0x84] ss:$16 sps:$4 sm:$0xff]  }
 0x6d4   : > { %v2783_v6 = vpop.f32.mrb[20].mxu0  ;;  %v2829_v2 = vpop.f32.mrb[36].mxu1 }
 0x6d5   : > { %v4865_v0 = vpop.f32.mrb[21].mxu0  ;;  %v4871_v10 = vpop.f32.mrb[37].mxu1 }
 0x6d6   : > { %v2786_v53 = vpop.f32.mrb[22].mxu0  ;;  %v2832_v12 = vpop.f32.mrb[38].mxu1 }
 0x6d7   : > { %v4866_v63 = vpop.f32.mrb[23].mxu0  ;;  %v4872_v14 = vpop.f32.mrb[39].mxu1 }
 0x6dc   : > { %v2875_v4 = vpop.f32.mrb[24].mxu0 }
 0x6dd   : > { %v2995_v29 = vcombine.low %v2783_v6, %v2875_v4  ;;  %v2996_v22 = vcombine.high %v2783_v6, %v2875_v4  ;;  %v4877_v5 = vpop.f32.mrb[25].mxu0 }
 0x6de   : > { %v2878_v55 = vpop.f32.mrb[26].mxu0 }
 0x6df   : > { %v4878_v56 = vpop.f32.mrb[27].mxu0  ;;  %v3003_v18 = vrot.slane %v2995_v29, %v6109_v24  ;;  %v3010_v37 = vrot.slane %v2996_v22, %v6109_v24 }
 0x6fc   : > { %v2921_v17 = vpop.f32.mrb[40].mxu1 }
 0x6fd   : > { %v3011_v19 = vcombine.low %v2829_v2, %v2921_v17  ;;  %v3012_v23 = vcombine.high %v2829_v2, %v2921_v17  ;;  %v4883_v58 = vpop.f32.mrb[41].mxu1 }
 0x6fe   : > { %v2924_v28 = vpop.f32.mrb[42].mxu1 }
 0x6ff   : > { %v3019_v7 = vrot.slane %v3011_v19, %v6109_v24  ;;  %v3026_v44 = vrot.slane %v3012_v23, %v6109_v24  ;;  %v4884_v45 = vpop.f32.mrb[43].mxu1 }
 0x701   : > { %v3027_v46 = vcombine.low %v3003_v18, %v3019_v7  ;;  %v3028_v47 = vcombine.high %v3003_v18, %v3019_v7  ;;  %v3043_v20 = vcombine.low %v3010_v37, %v3026_v44  ;;  %v3044_v21 = vcombine.high %v3010_v37, %v3026_v44  ;;  %v5254_v18 = vld [vmem:[#allocation2] sm:$0xff] }
 0x703   : > { %v3035_v30 = vrot.slane %v3027_v46, %v6112_v31  ;;  %v3042_v32 = vrot.slane %v3028_v47, %v6112_v31  ;;  %v3051_v40 = vrot.slane %v3043_v20, %v6112_v31  ;;  %v3058_v33 = vrot.slane %v3044_v21, %v6112_v31  ;;  %v5118_v46 = vld [vmem:[%s5942_s25] ss:$16 sps:$4 sm:$0xff]   ;;  %v5120_v47 = vld [vmem:[%s5942_s25 + $0x4] ss:$16 sps:$4 sm:$0xff]   ;;  %v5121_v20 = vld [vmem:[%s5942_s25 + $0x8] ss:$16 sps:$4 sm:$0xff]  }
 0x704   : > { %v5123_v21 = vld [vmem:[%s5942_s25 + $0xc] ss:$16 sps:$4 sm:$0xff]   ;;  %3601 = vmatprep.subr.bf16.mxu1 %v5120_v47  ;;  %v5168_v47 = vld [vmem:[%s6825_s13] sm:$0xff]  }
 0x705   : > { %v3131_v34 = vcombine.low %v3035_v30, %v3042_v32  ;;  %v4564_v36 = vcombine.high %v3035_v30, %v3042_v32  ;;  %v3147_v62 = vcombine.low %v3051_v40, %v3058_v33  ;;  %v4565_v38 = vcombine.high %v3051_v40, %v3058_v33  ;;  %v5126_v30 = vld [vmem:[%s5942_s25 + $0x24] ss:$16 sps:$4 sm:$0xff]   ;;  %v5129_v32 = vld [vmem:[%s5942_s25 + $0x2c] ss:$16 sps:$4 sm:$0xff]   ;;  %3644 = vmatprep.subr.bf16.mxu0 %v5123_v21  ;;  %v5124_v40 = vld [vmem:[%s5942_s25 + $0x20] ss:$16 sps:$4 sm:$0xff]  }
 0x706   : > { %3602 = vmatpush1.bf16.msra.mxu1 %v5118_v46  ;;  %v5127_v33 = vld [vmem:[%s5942_s25 + $0x28] ss:$16 sps:$4 sm:$0xff]   ;;  %v5167_v46 = vld [vmem:[%s6825_s13 + $0xc0] sm:$0xff]  }
 0x707   : > { %v3138_v15 = vrot.slane %v3131_v34, %v6109_v24  ;;  %v3146_v39 = vrot.slane %v4564_v36, %v6109_v24  ;;  %v3154_v41 = vrot.slane %v3147_v62, %v6109_v24  ;;  %v3162_v42 = vrot.slane %v4565_v38, %v6109_v24  ;;  %3603 = vmatprep.subr.bf16.mxu1 %v5126_v30  ;;  %v5170_v21 = vld [vmem:[%s6825_s13 + $0x48] sm:$0xff]  }
 0x708   : > { %v5171_v30 = vld [vmem:[%s6825_s13 + $0xc8] sm:$0xff]  }
 0x709   : > { %v3164_v43 = vcombine.high %v3138_v15, %v3146_v39  ;;  %v3180_v16 = vcombine.high %v3154_v41, %v3162_v42  ;;  %v3163_v25 = vcombine.low %v3138_v15, %v3146_v39  ;;  %v3179_v48 = vcombine.low %v3154_v41, %v3162_v42  ;;  %v5132_v42 = vld [vmem:[%s5942_s25 + $0x44] ss:$16 sps:$4 sm:$0xff]  }
 0x70a   : > { %3604 = vmatpush1.bf16.msra.mxu1 %v5124_v40  ;;  %v5173_v40 = vld [vmem:[%s6825_s13 + $0x88] sm:$0xff]  }
 0x70b   : > { %v3178_v49 = vrot.slane %v3164_v43, %v6112_v31  ;;  %v3194_v11 = vrot.slane %v3180_v16, %v6112_v31  ;;  %v3171_v57 = vrot.slane %v3163_v25, %v6112_v31  ;;  %v3187_v50 = vrot.slane %v3179_v48, %v6112_v31  ;;  %v5135_v43 = vld [vmem:[%s5942_s25 + $0x4c] ss:$16 sps:$4 sm:$0xff]   ;;  %v5130_v16 = vld [vmem:[%s5942_s25 + $0x40] ss:$16 sps:$4 sm:$0xff]   ;;  %v5133_v25 = vld [vmem:[%s5942_s25 + $0x48] ss:$16 sps:$4 sm:$0xff]   ;;  %3605 = vmatprep.subr.bf16.mxu1 %v5132_v42 }
 0x70c   : > { %v5138_v48 = vld [vmem:[%s5942_s25 + $0x64] ss:$16 sps:$4 sm:$0xff]  }
 0x70d   : > { %v3197_v6 = vcombine.low %v3178_v49, %v3194_v11  ;;  %v3196_v2 = vcombine.high %v3171_v57, %v3187_v50  ;;  %v3195_v0 = vcombine.low %v3171_v57, %v3187_v50  ;;  %v3198_v24 = vcombine.high %v3178_v49, %v3194_v11  ;;  %v5141_v49 = vld [vmem:[%s5942_s25 + $0x6c] ss:$16 sps:$4 sm:$0xff]   ;;  %v5136_v11 = vld [vmem:[%s5942_s25 + $0x60] ss:$16 sps:$4 sm:$0xff]   ;;  %v5139_v57 = vld [vmem:[%s5942_s25 + $0x68] ss:$16 sps:$4 sm:$0xff]  }
 0x70e   : > { %3606 = vmatpush1.bf16.msra.mxu1 %v5130_v16  ;;  %v5142_v50 = vld [vmem:[%s5942_s25 + $0x80] ss:$16 sps:$4 sm:$0xff]  }
 0x70f   : > { %v5068_v10 = vpack.i.bf16 %v3197_v6, %v3129_v26  ;;  %v5063_v53 = vpack.i.bf16 %v3196_v2, %v3128_v1  ;;  %v5073_v12 = vpack.i.bf16 %v3198_v24, %v3130_v3  ;;  %3607 = vmatprep.subr.bf16.mxu1 %v5138_v48  ;;  %v5145_v6 = vld [vmem:[%s5942_s25 + $0x88] ss:$16 sps:$4 sm:$0xff]   ;;  %v5147_v2 = vld [vmem:[%s5942_s25 + $0x8c] ss:$16 sps:$4 sm:$0xff]   ;;  %v5183_v42 = vld [vmem:[%s6825_s13 + $0xe0] sm:$0xff]  }
 0x710   : > { %v5153_v24 = vld [vmem:[%s5942_s25 + $0xac] ss:$16 sps:$4 sm:$0xff]   ;;  %v5185_v16 = vld [vmem:[%s6825_s13 + $0xa0] sm:$0xff]  }
 0x711   : > { %5069 = vrot.lane.b32.xlu1 %v5068_v10, %s5546_s20  ;;  %5064 = vrot.lane.b32.xlu0 %v5063_v53, %s5548_s24  ;;  %v5148_v10 = vld [vmem:[%s5942_s25 + $0xa0] ss:$16 sps:$4 sm:$0xff]   ;;  %v5151_v53 = vld [vmem:[%s5942_s25 + $0xa8] ss:$16 sps:$4 sm:$0xff]  }
 0x712   : > { %3608 = vmatpush1.bf16.msra.mxu1 %v5136_v11  ;;  %v5187_v48 = vld [vmem:[%s6825_s13 + $0xe8] sm:$0xff]  }
 0x713   : > { %3609 = vmatprep.subr.bf16.mxu1 %v5144_v51  ;;  %v5189_v11 = vld [vmem:[%s6825_s13 + $0xa8] sm:$0xff]   ;;  %v5192_v51 = vld [vmem:[%s6825_s13 + $0x30] sm:$0xff]  }
 0x715   : > { %5074 = vrot.lane.b32.xlu1 %v5073_v12, %s5547_s7  ;;  %v5156_v12 = vld [vmem:[%s5942_s25 + $0xc4] ss:$16 sps:$4 sm:$0xff]  }
 0x716   : > { %3610 = vmatpush1.bf16.msra.mxu1 %v5142_v50  ;;  %v5191_v50 = vld [vmem:[%s6825_s13 + $0xf0] sm:$0xff]  }
 0x783   : > { %v5070_v9 = vpop.permute.xlu1 %5069  ;;  %v5065_v63 = vpop.permute.xlu0 %5064 }
 0x784   : > { %v5067_v14 = vunpack.i.h.bf16 %v5065_v63  ;;  %v5066_v4 = vunpack.i.l.bf16 %v5065_v63  ;;  %v5072_v31 = vunpack.i.h.bf16 %v5070_v9  ;;  %v5071_v29 = vunpack.i.l.bf16 %v5070_v9  ;;  %v5159_v9 = vld [vmem:[%s5942_s25 + $0xcc] ss:$16 sps:$4 sm:$0xff]   ;;  %v5154_v63 = vld [vmem:[%s5942_s25 + $0xc0] ss:$16 sps:$4 sm:$0xff]  }
 0x786   : > { %v3223_v26 = vsel %vm2092_vm1, %v3127_v54, %v5066_v4  ;;  %v3224_v1 = vsel %vm2092_vm1, %v3195_v0, %v5067_v14  ;;  %v5150_v0 = vld [vmem:[%s5942_s25 + $0xa4] ss:$16 sps:$4 sm:$0xff]   ;;  %v5157_v14 = vld [vmem:[%s5942_s25 + $0xc8] ss:$16 sps:$4 sm:$0xff]  }
 0x787   : > { %v5075_v3 = vpop.permute.xlu1 %5074  ;;  %v3226_v55 = vsel %vm3225_vm4, %v3223_v26, %v5071_v29  ;;  %v3227_v56 = vsel %vm3225_vm4, %v3224_v1, %v5072_v31  ;;  %3611 = vmatprep.subr.bf16.mxu1 %v5150_v0  ;;  %v5162_v4 = vld [vmem:[%s5942_s25 + $0xe4] ss:$16 sps:$4 sm:$0xff]   ;;  %v5165_v31 = vld [vmem:[%s5942_s25 + $0xec] ss:$16 sps:$4 sm:$0xff]   ;;  %v5160_v29 = vld [vmem:[%s5942_s25 + $0xe0] ss:$16 sps:$4 sm:$0xff]  }
 0x788   : > { %v5077_v22 = vunpack.i.h.bf16 %v5075_v3  ;;  %v5076_v5 = vunpack.i.l.bf16 %v5075_v3  ;;  %3612 = vmatpush1.bf16.msra.mxu1 %v5148_v10  ;;  %v5163_v26 = vld [vmem:[%s5942_s25 + $0xe8] ss:$16 sps:$4 sm:$0xff]  }
 0x789   : > { %3613 = vmatprep.subr.bf16.mxu1 %v5156_v12  ;;  %v5195_v0 = vld [vmem:[%s6825_s13 + $0xf8] sm:$0xff]   ;;  %v3435_v12 = vsub.s32 3, %v6069_v59 }
 0x78a   : > { %v3229_v17 = vsel %vm3228_vm5, %v3226_v55, %v5076_v5  ;;  %v3230_v19 = vsel %vm3228_vm5, %v3227_v56, %v5077_v22  ;;  %v5197_v10 = vld [vmem:[%s6825_s13 + $0xb8] sm:$0xff]  }
 0x78b   : > { %v3231_v23 = vpack.c.bf16 %v3230_v19, %v3229_v17 }
 0x78c   : > { %3614 = vmatpush1.bf16.msra.mxu1 %v5154_v63 }
 0x78d   : > { %4902 = vmatmul.mubr.bf16.vlgmr.msra.gmra.mrb[28].mxu0 %v3231_v23  ;;  %3615 = vmatprep.subr.bf16.mxu1 %v5162_v4  ;;  %v4575_v23 = vld [vmem:[%s859_s30] ss:$0 sm:$0xff] }
 0x78e   : > { %3676 = vmatprep.mubr.bf16.mxu0 %v5544_v35  ;;  %v5255_v35 = vld [vmem:[#allocation2 + $0x8] sm:$0xff]  ;;  %3645 = vmatpush1.bf16.msra.mxu0 %v5121_v20  ;;  %v5169_v20 = vld [vmem:[%s6825_s13 + $0x80] sm:$0xff]  }
 0x78f   : > { %3646 = vmatprep.subr.bf16.mxu0 %v5129_v32  ;;  %v5172_v32 = vld [vmem:[%s6825_s13 + $0x8] sm:$0xff]  }
 0x790   : > { %3616 = vmatpush1.bf16.msra.mxu1 %v5160_v29 }
 0x792   : > { %3647 = vmatpush1.bf16.msra.mxu0 %v5127_v33  ;;  %v5174_v33 = vld [vmem:[%s6825_s13 + $0x50] sm:$0xff]  }
 0x793   : > { %3648 = vmatprep.subr.bf16.mxu0 %v5135_v43  ;;  %v5184_v43 = vld [vmem:[%s6825_s13 + $0x20] sm:$0xff]  }
 0x796   : > { %3649 = vmatpush1.bf16.msra.mxu0 %v5133_v25  ;;  %v5186_v25 = vld [vmem:[%s6825_s13 + $0x68] sm:$0xff]  }
 0x797   : > { %3650 = vmatprep.subr.bf16.mxu0 %v5141_v49  ;;  %v5188_v49 = vld [vmem:[%s6825_s13 + $0x28] sm:$0xff]  }
 0x79a   : > { %3651 = vmatpush1.bf16.msra.mxu0 %v5139_v57  ;;  %v5190_v57 = vld [vmem:[%s6825_s13 + $0x70] sm:$0xff]  }
 0x79b   : > { %3652 = vmatprep.subr.bf16.mxu0 %v5147_v2  ;;  %v5194_v2 = vld [vmem:[%s6825_s13 + $0x78] sm:$0xff]  }
 0x79e   : > { %3653 = vmatpush1.bf16.msra.mxu0 %v5145_v6  ;;  %v5193_v6 = vld [vmem:[%s6825_s13 + $0xb0] sm:$0xff]  }
 0x79f   : > { %3654 = vmatprep.subr.bf16.mxu0 %v5153_v24  ;;  %v5196_v24 = vld [vmem:[%s6825_s13 + $0x38] sm:$0xff]  }
 0x7a2   : > { %3655 = vmatpush1.bf16.msra.mxu0 %v5151_v53  ;;  %v3419_v53 = vld [vmem:[%s6001_s9] sm:$0xf] }
 0x7a3   : > { %3656 = vmatprep.subr.bf16.mxu0 %v5159_v9  ;;  %v3424_v9 = vrot.slane %v3419_v53, %v964_v60  ;;  %v3432_v63 = vrot.slane %v3419_v53, %v972_v13  ;;  %v3436_v29 = vrot.slane %v3419_v53, %v3435_v12 }
 0x7a6   : > { %3657 = vmatpush1.bf16.msra.mxu0 %v5157_v14 }
 0x7a7   : > { %3658 = vmatprep.subr.bf16.mxu0 %v5165_v31  ;;  %v3428_v31 = vrot.slane %v3419_v53, %v968_v61 }
 0x7aa   : > { %3659 = vmatpush1.bf16.msra.mxu0 %v5163_v26 }
 0x7ab   : > { %4738 = vmatprep.subr.bf16.mxu0 %v5167_v46 }
 0x860   : > { %v3337_v27 = vpop.f32.mrb[28].mxu0 }
 0x861   : > { %v3338_v54 = vadd.f32 %v4566_v52, %v3337_v27  ;;  %v4903_v58 = vpop.f32.mrb[29].mxu0 }
 0x862   : > { %v3340_v28 = vpop.f32.mrb[30].mxu0  ;;  %v4576_v58 = vld [vmem:[%s862_s1] ss:$0 sm:$0xff] }
 0x863   : > { %v6509_v37 = vadd.f32 %v5254_v18, %v3338_v54  ;;  %v3341_v7 = vadd.f32 %v4566_v52, %v3340_v28  ;;  %v4904_v44 = vpop.f32.mrb[31].mxu0 }
 0x865   : > { %v6511_v45 = vadd.f32 %v5255_v35, %v3341_v7  ;;  %3348 = vadd.xlane.f32.xlu1 %v6509_v37  ;;  %v5166_v35 = vld [vmem:[%s6825_s13 + $0x40] sm:$0xff]  }
 0x866   : > { %4716 = vmatprep.subr.bf16.mxu1 %v5166_v35 }
 0x867   : > { %3350 = vadd.xlane.f32.xlu0 %v6511_v45 }
 0x8f2   : > { %v3349_v34 = vpop.xlane.xlu1 %3348 }
 0x8f3   : > { %v3352_v36 = vmul.f32 0.0078125, %v3349_v34  ;;  %v5175_v34 = vld [vmem:[%s6825_s13 + $0xd0] sm:$0xff]  }
 0x8f4   : > { %v3351_v62 = vpop.xlane.xlu0 %3350 }
 0x8f5   : > { %v6524_v38 = vsub.f32 %v6509_v37, %v3352_v36  ;;  %v3353_v8 = vmul.f32 0.0078125, %v3351_v62  ;;  %v5176_v36 = vld [vmem:[%s6825_s13 + $0x10] sm:$0xff]  }
 0x8f6   : > { %v5177_v62 = vld [vmem:[%s6825_s13 + $0x90] sm:$0xff]  }
 0x8f7   : > { %v6527_v15 = vsub.f32 %v6511_v45, %v3353_v8  ;;  %v3356_v39 = vmul.f32 %v6524_v38, %v6524_v38  ;;  %v5179_v8 = vld [vmem:[%s6825_s13 + $0xd8] sm:$0xff]  }
 0x8f9   : > { %3358 = vadd.xlane.f32.xlu0 %v3356_v39  ;;  %v3357_v41 = vmul.f32 %v6527_v15, %v6527_v15  ;;  %v5181_v39 = vld [vmem:[%s6825_s13 + $0x98] sm:$0xff]  }
 0x8fd   : > { %3360 = vadd.xlane.f32.xlu0 %v3357_v41  ;;  %v5182_v41 = vld [vmem:[%s6825_s13 + $0x60] sm:$0xff]  }
 0x986   : > { %v3359_v1 = vpop.xlane.xlu0 %3358 }
 0x987   : > { %v3362_v3 = vmul.f32 0.0078125, %v3359_v1 }
 0x989   : > { %v3364_v22 = vadd.f32 1e-05, %v3362_v3 }
 0x98a   : > { %v3361_v5 = vpop.xlane.xlu0 %3360 }
 0x98b   : > { %5234 = vrsqrt.f32 %v3364_v22  ;;  %v3363_v55 = vmul.f32 0.0078125, %v3361_v5 }
 0x98d   : > { %v3365_v56 = vadd.f32 1e-05, %v3363_v55 }
 0x98f   : > { %5236 = vrsqrt.f32 %v3365_v56 }
 0x995   : > { %v5235_v17 = vpop.eup %5234 }
 0x996   : > { %v3368_v19 = vmul.f32 %v5235_v17, %v6524_v38  ;;  %v5178_v38 = vld [vmem:[%s6825_s13 + $0x58] sm:$0xff]  }
 0x998   : > { %v3376_v54 = vmul.f32 %v4575_v23, %v3368_v19 }
 0x999   : > { %v5237_v52 = vpop.eup %5236 }
 0x99a   : > { %v3369_v27 = vmul.f32 %v5237_v52, %v6527_v15  ;;  %v3384_v18 = vadd.f32 %v4576_v58, %v3376_v54  ;;  %v5180_v15 = vld [vmem:[%s6825_s13 + $0x18] sm:$0xff]  }
 0x99c   : > { %v3377_v28 = vmul.f32 %v4575_v23, %v3369_v27 }
 0x99e   : > { %v3385_v7 = vadd.f32 %v4576_v58, %v3377_v28 }
 0x9a0   : > { %v3386_v44 = vpack.c.bf16 %v3385_v7, %v3384_v18 }
 0x9a2   : > { %3634 = vmatmul.mubr.bf16.vlgmr.msra.gmra.mrb[44].mxu1 %v3386_v44  ;;  %3677 = vmatmul.mubr.bf16.vlgmr.msra.gmra.mrb[32].mxu0 %v3386_v44 }
 0x9a3   : > { %4717 = vmatpush3.bf16.msra.mxu1 %v5168_v47  ;;  %4739 = vmatpush3.bf16.msra.mxu0 %v5169_v20 }
 0x9a4   : > { %4718 = vmatprep.subr.bf16.mxu1 %v5170_v21  ;;  %4740 = vmatprep.subr.bf16.mxu0 %v5171_v30 }
 0x9a7   : > { %4719 = vmatpush3.bf16.msra.mxu1 %v5172_v32  ;;  %4741 = vmatpush3.bf16.msra.mxu0 %v5173_v40 }
 0x9a8   : > { %4720 = vmatprep.subr.bf16.mxu1 %v5174_v33  ;;  %4742 = vmatprep.subr.bf16.mxu0 %v5175_v34 }
 0x9ab   : > { %4721 = vmatpush3.bf16.msra.mxu1 %v5176_v36  ;;  %4743 = vmatpush3.bf16.msra.mxu0 %v5177_v62 }
 0x9ac   : > { %4722 = vmatprep.subr.bf16.mxu1 %v5178_v38  ;;  %4744 = vmatprep.subr.bf16.mxu0 %v5179_v8 }
 0x9af   : > { %4723 = vmatpush3.bf16.msra.mxu1 %v5180_v15  ;;  %4745 = vmatpush3.bf16.msra.mxu0 %v5181_v39 }
 0x9b0   : > { %4724 = vmatprep.subr.bf16.mxu1 %v5182_v41  ;;  %4746 = vmatprep.subr.bf16.mxu0 %v5183_v42 }
 0x9b3   : > { %4725 = vmatpush3.bf16.msra.mxu1 %v5184_v43  ;;  %4747 = vmatpush3.bf16.msra.mxu0 %v5185_v16 }
 0x9b4   : > { %4726 = vmatprep.subr.bf16.mxu1 %v5186_v25  ;;  %4748 = vmatprep.subr.bf16.mxu0 %v5187_v48 }
 0x9b7   : > { %4727 = vmatpush3.bf16.msra.mxu1 %v5188_v49  ;;  %4749 = vmatpush3.bf16.msra.mxu0 %v5189_v11 }
 0x9b8   : > { %4728 = vmatprep.subr.bf16.mxu1 %v5190_v57  ;;  %4750 = vmatprep.subr.bf16.mxu0 %v5191_v50 }
 0x9bb   : > { %4729 = vmatpush3.bf16.msra.mxu1 %v5192_v51  ;;  %4751 = vmatpush3.bf16.msra.mxu0 %v5193_v6  ;;  %v4613_v51 = vld [vmem:[%s869_s6] ss:$0 sm:$0xff]  ;;  %s6828_s6 = sld [smem:[#allocation35_spill]] (!%p4646_p6) }
 0x9bc   : > { %4730 = vmatprep.subr.bf16.mxu1 %v5194_v2  ;;  %4752 = vmatprep.subr.bf16.mxu0 %v5195_v0 }
 0x9bf   : > { %4731 = vmatpush3.bf16.msra.mxu1 %v5196_v24  ;;  %4753 = vmatpush3.bf16.msra.mxu0 %v5197_v10 }
 0x9c1   : > { %s4081_s22 = sld [smem:[#allocation4 + %s6828_s6]] (!%p4646_p6)  ;;  %s4084_s16 = sadd.s32 (!%p4646_p6), 1, %s6828_s6 }
 0x9c2   : > { %s4085_s17 = sld [smem:[#allocation4 + %s4084_s16]] (!%p4646_p6) }
 0x9c3   : > { %s6831_s6 = sld [smem:[#allocation49_spill]] (!%p4646_p6) }
 0x9c7   : > { %s4082_s18 = scalar_lea.vmem (!%p4646_p6), [#allocation2], %s4081_s22 }
 0x9c8   : > { %s4359_s19 = scalar_lea.vmem (!%p4646_p6), [#allocation2], %s4085_s17  ;;  %s6832_s17 = sld [smem:[#allocation50_spill]] (!%p4646_p6) }
 0xa75   : > { %v3635_v14 = vpop.f32.mrb[44].mxu1  ;;  %v3678_v4 = vpop.f32.mrb[32].mxu0 }
 0xa76   : > { %v3637_v26 = vpop.f32.mrb[45].mxu1  ;;  %v3680_v1 = vpop.f32.mrb[33].mxu0  ;;  %v3636_v5 = vadd.f32 %v3635_v14, %v3424_v9  ;;  %v3679_v55 = vadd.f32 %v3678_v4, %v3432_v63 }
 0xa77   : > { %v3639_v3 = vpop.f32.mrb[46].mxu1  ;;  %v3682_v22 = vpop.f32.mrb[34].mxu0  ;;  %v3638_v60 = vadd.f32 %v3637_v26, %v3428_v31  ;;  %v3681_v52 = vadd.f32 %v3680_v1, %v3436_v29 }
 0xa78   : > { %v3640_v56 = vadd.f32 %v3639_v3, %v3424_v9  ;;  %v3683_v17 = vadd.f32 %v3682_v22, %v3432_v63  ;;  %v3641_v19 = vpop.f32.mrb[47].mxu1  ;;  %v3684_v23 = vpop.f32.mrb[35].mxu0 }
 0xa79   : > { %v3642_v27 = vadd.f32 %v3641_v19, %v3428_v31  ;;  %v3685_v13 = vadd.f32 %v3684_v23, %v3436_v29  ;;  %v5257_v19 = vld [vmem:[%s6830_s21 + $0x8] sm:$0xff] (!%p4646_p6)  }
 0xa7a   : > { %v3687_v54 = vpack.c.bf16 %v3640_v56, %v3636_v5  ;;  %v3689_v58 = vpack.c.bf16 %v3683_v17, %v3679_v55  ;;  %v5551_v17 = vmov (!%p4646_p6), 0.0  }
 0xa7b   : > { %v3688_v28 = vpack.c.bf16 %v3642_v27, %v3638_v60  ;;  %v3690_v59 = vpack.c.bf16 %v3685_v13, %v3681_v52  ;;  %4905 = vmatprep.subr.bf16.mxu0 (!%p4646_p6), %v5551_v17 }
 0xa7c   : > { %v4609_v61 = vmul.bf16 3218784218, %v3687_v54  ;;  %v4611_v18 = vmul.bf16 3218784218, %v3689_v58 }
 0xa7d   : > { %v4610_v7 = vmul.bf16 3218784218, %v3688_v28  ;;  %v4612_v44 = vmul.bf16 3218784218, %v3690_v59 }
 0xa7e   : > { %v3700_v35 = vmul.bf16 1069105081, %v4609_v61  ;;  %v3706_v46 = vmul.bf16 1069105081, %v4611_v18  ;;  %v5262_v61 = vld [vmem:[%s6830_s21 + $0x30] sm:$0xff] (!%p4646_p6)   ;;  %v5263_v18 = vld [vmem:[%s6830_s21 + $0x38] sm:$0xff] (!%p4646_p6)  }
 0xa7f   : > { %v3703_v47 = vmul.bf16 1069105081, %v4610_v7  ;;  %v3709_v20 = vmul.bf16 1069105081, %v4612_v44 }
 0xa80   : > { %5238 = vpow.bf16 %v3700_v35 }
 0xa81   : > { %5240 = vpow.bf16 %v3706_v46 }
 0xa82   : > { %5242 = vpow.bf16 %v3703_v47  ;;  %v4649_v47 = vld [vmem:[%s6831_s6] ss:$0 sm:$0xff] (!%p4646_p6) }
 0xa83   : > { %5244 = vpow.bf16 %v3709_v20 }
 0xa8b   : > { %v5239_v21 = vpop.eup %5238 }
 0xa8c   : > { %v5241_v30 = vpop.eup %5240  ;;  %v3711_v32 = vadd.bf16 1065369472, %v5239_v21  ;;  %v4650_v21 = vld [vmem:[%s6832_s17] ss:$0 sm:$0xff] (!%p4646_p6) }
 0xa8d   : > { %v5243_v40 = vpop.eup %5242  ;;  %v3713_v33 = vadd.bf16 1065369472, %v5241_v30 }
 0xa8e   : > { %v5245_v34 = vpop.eup %5244  ;;  %5246 = vrcp.bf16 %v3711_v32  ;;  %v3712_v36 = vadd.bf16 1065369472, %v5243_v40 }
 0xa8f   : > { %5248 = vrcp.bf16 %v3713_v33  ;;  %v3714_v62 = vadd.bf16 1065369472, %v5245_v34 }
 0xa90   : > { %5250 = vrcp.bf16 %v3712_v36 }
 0xa91   : > { %5252 = vrcp.bf16 %v3714_v62 }
 0xa99   : > { %v5247_v38 = vpop.eup %5246 }
 0xa9a   : > { %v5249_v8 = vpop.eup %5248  ;;  %v3716_v39 = vmul.bf16 1065369472, %v5247_v38 }
 0xa9b   : > { %v5251_v15 = vpop.eup %5250  ;;  %v3720_v42 = vmul.bf16 1065369472, %v5249_v8 }
 0xa9c   : > { %v5253_v41 = vpop.eup %5252  ;;  %v3718_v43 = vmul.bf16 1065369472, %v5251_v15  ;;  %v3723_v48 = vmul.bf16 %v3716_v39, %v3687_v54  ;;  %v5258_v54 = vld [vmem:[%s6830_s21 + $0x10] sm:$0xff] (!%p4646_p6)  }
 0xa9d   : > { %v3722_v16 = vmul.bf16 1065369472, %v5253_v41  ;;  %v3725_v11 = vmul.bf16 %v3720_v42, %v3689_v58  ;;  %v5259_v58 = vld [vmem:[%s6830_s21 + $0x18] sm:$0xff] (!%p4646_p6)  }
 0xa9e   : > { %v3724_v25 = vmul.bf16 %v3718_v43, %v3688_v28  ;;  %v5260_v28 = vld [vmem:[%s6830_s21 + $0x20] sm:$0xff] (!%p4646_p6)  }
 0xa9f   : > { %v3726_v49 = vmul.bf16 %v3722_v16, %v3690_v59  ;;  %v5261_v59 = vld [vmem:[%s6830_s21 + $0x28] sm:$0xff] (!%p4646_p6)  }
 0xaa0   : > { %4022 = vmatprep.mubr.bf16.mxu1 %v3724_v25 }
 0xaa1   : > { %4063 = vmatprep.mubr.bf16.mxu0 %v3726_v49  ;;  %4023 = vmatmul.mubr.bf16.vlgmr.msra.gmra.mrb[48].mxu1 %v3723_v48 }
 0xaa2   : > { %4064 = vmatmul.mubr.bf16.vlgmr.msra.gmra.mrb[36].mxu0 %v3725_v11 }
 0xaa3   : > { %4921 = vmatprep.mubr.msk.bf16.mxu0 (!%p4646_p6), %vm5552_vm8, %v5551_v17 }
 0xb74   : > { %v4732_v57 = vpop.f32.mrb[48].mxu1 }
 0xb75   : > { %v4754_v50 = vpop.f32.mrb[36].mxu0  ;;  %v4733_v6 = vpop.f32.mrb[49].mxu1 }
 0xb76   : > { %v4734_v2 = vadd.f32 %v4733_v6, %v4732_v57  ;;  %v4755_v0 = vpop.f32.mrb[37].mxu0  ;;  %v4735_v24 = vpop.f32.mrb[50].mxu1 }
 0xb77   : > { %v4756_v10 = vadd.f32 %v4755_v0, %v4754_v50  ;;  %v4757_v53 = vpop.f32.mrb[38].mxu0  ;;  %v4736_v12 = vpop.f32.mrb[51].mxu1 }
 0xb78   : > { %v4025_v9 = vadd.f32 %v4734_v2, %v4613_v51  ;;  %v4737_v63 = vadd.f32 %v4736_v12, %v4735_v24  ;;  %v4758_v14 = vpop.f32.mrb[39].mxu0 }
 0xb79   : > { %v4759_v4 = vadd.f32 %v4758_v14, %v4757_v53 }
 0xb7a   : > { %v4066_v31 = vadd.f32 %v4756_v10, %v4025_v9  ;;  %v4028_v29 = vadd.f32 %v4737_v63, %v4613_v51  ;;  %4079 = sbr.rel (%p4646_p6) target bundleno = 3485 (0xd9d), region = 116 }
 0xb7c   : > { %v4072_v26 = vadd.f32 %v4066_v31, %v6509_v37  ;;  %v4069_v1 = vadd.f32 %v4759_v4, %v4028_v29 }
 0xb7e   : > { %4074 = vst [vmem:[#allocation2] sm:$0xff] %v4072_v26  ;;  %v4073_v3 = vadd.f32 %v4069_v1, %v6511_v45  ;;  %v5256_v45 = vld [vmem:[%s6829_s3] sm:$0xff] (!%p4646_p6)  }
 0xb7f   : > { %4906 = vmatpush3.bf16.msra.mxu0 (!%p4646_p6), %v5256_v45 }
 0xb80   : > { %4075 = vst [vmem:[#allocation2 + $0x8] sm:$0xff] %v4073_v3  ;;  %4907 = vmatprep.subr.bf16.mxu0 (!%p4646_p6), %v5551_v17 }
 0xb83   : > { %4908 = vmatpush3.bf16.msra.mxu0 %v5257_v19 }
 0xb84   : > { %4909 = vmatprep.subr.bf16.mxu0 %v5551_v17 }
 0xb87   : > { %v4083_v22 = vld [vmem:[%s4082_s18] sm:$0x1]  ;;  %v4648_v5 = vld [vmem:[%s4359_s19 + $0x8] sm:$0x1]  ;;  %4910 = vmatpush3.bf16.msra.mxu0 %v5258_v54 }
 0xb88   : > { %v4090_v55 = vrot.slane %v4648_v5, 7  ;;  %4911 = vmatprep.subr.bf16.mxu0 %v5551_v17 }
 0xb8a   : > { %v4093_v37 = vsel %vm4092_vm6, %v4083_v22, %v4090_v55 }
 0xb8b   : > { %v4097_v56 = vsel %vm4096_vm7, %v4093_v37, 0.0  ;;  %4912 = vmatpush3.bf16.msra.mxu0 %v5259_v58 }
 0xb8c   : > { %4098 = vadd.xlane.f32.xlu0 %v4097_v56  ;;  %4913 = vmatprep.subr.bf16.mxu0 %v5551_v17 }
 0xb8f   : > { %4914 = vmatpush3.bf16.msra.mxu0 %v5260_v28 }
 0xb90   : > { %4915 = vmatprep.subr.bf16.mxu0 %v5551_v17 }
 0xb93   : > { %4916 = vmatpush3.bf16.msra.mxu0 %v5261_v59 }
 0xb94   : > { %4917 = vmatprep.subr.bf16.mxu0 %v5551_v17 }
 0xb97   : > { %4918 = vmatpush3.bf16.msra.mxu0 %v5262_v61 }
 0xb98   : > { %4919 = vmatprep.subr.bf16.mxu0 %v5551_v17 }
 0xb9b   : > { %4920 = vmatpush3.bf16.msra.mxu0 %v5263_v18 }
 0xc19   : > { %v4099_v23 = vpop.xlane.xlu0 %4098 }
 0xc1a   : > { %v4100_v60 = vmul.f32 0.0078125, %v4099_v23 }
 0xc1c   : > { %v4101_v52 = vsub.f32 %v4093_v37, %v4100_v60 }
 0xc1e   : > { %v4102_v27 = vmul.f32 %v4101_v52, %v4101_v52 }
 0xc20   : > { %v4103_v13 = vsel %vm4096_vm7, %v4102_v27, 0.0 }
 0xc21   : > { %4104 = vadd.xlane.f32.xlu0 %v4103_v13 }
 0xcae   : > { %v4105_v7 = vpop.xlane.xlu0 %4104 }
 0xcaf   : > { %v4106_v44 = vmul.f32 0.0078125, %v4105_v7 }
 0xcb1   : > { %v4107_v35 = vadd.f32 1e-05, %v4106_v44 }
 0xcb3   : > { %5264 = vrsqrt.f32 %v4107_v35 }
 0xcbd   : > { %v5265_v46 = vpop.eup %5264 }
 0xcbe   : > { %v4109_v20 = vmul.f32 %v5265_v46, %v4101_v52 }
 0xcc0   : > { %v4116_v30 = vmul.f32 %v4649_v47, %v4109_v20 }
 0xcc2   : > { %v4123_v32 = vadd.f32 %v4650_v21, %v4116_v30 }
 0xcc4   : > { %v4124_v40 = vpack.c.bf16 %v4123_v32, %v4123_v32 }
 0xcc6   : > { %4922 = vmatmul.mubr.bf16.vlgmr.msra.gmra.mrb[0].mxu0 %v4124_v40 }
 0xd99   : > { %v4223_v33 = vpop.f32.mrb[0].mxu0 }
 0xd9a   : > { %4230 = vst.msk [vmem:[%s837_s2] sm:$0x3] %vm4229_vm9, %v4223_v33  ;;  %v4923_v34 = vpop.f32.mrb[1].mxu0 }
 0xd9b   : > { %v4226_v36 = vpop.f32.mrb[2].mxu0 }
 0xd9c   : > { %v4924_v62 = vpop.f32.mrb[3].mxu0 }
 0xd9d PF: > { %s6833_s18 = sld [smem:[#allocation24_spill]]  ;;  %s6834_s19 = sld [smem:[#allocation20_spill]] }
 0xd9e   : > { %s6835_s20 = sld [smem:[#allocation32_spill]]  ;;  %s6836_s29 = sld [smem:[#allocation52_spill]] }
 0xd9f   : > { %s4245_s15 = sshll.u32 %s837_s2, 4  ;;  %s5553_s25 = smov [#allocation13]   ;;  %s4246_s15 = int_to_ptr.vmem [resolvable:$true] %s4245_s15 }
 0xda0   : > { %s5398_s13 = scalar_lea.vmem %s4246_s15, 32  ;;  %s5402_s26 = sshll.u32 %s5553_s25, 4  ;;  %s5403_s26 = int_to_ptr.vmem [resolvable:$false] %s5402_s26 }
 0xda1   : > { %p5399_p7 = scmp.ne.s32.totalorder %s4246_s15, %s5398_s13  ;;  %s5404_s0 = scalar_lea.vmem %s5403_s26, 64 }
 0xda2   : > { %p5405_p10 = scmp.lt.s32.totalorder %s4246_s15, %s5403_s26  ;;  %p5406_p2 = scmp.lt.s32.totalorder %s5404_s0, %s5398_s13 }
 0xda3   : > { %s4660_s7 = sshll.u32 %s6833_s18, 5  ;;  %s6838_s12 = sand.u32 1, %s6834_s19  }
 0xda4   : > { %s6837_s11 = smov %s6836_s29  ;;  %s6657_s23 = scalar_lea.hbm %s6836_s29, %s4660_s7 }
 0xda5   : > { %s4232_s14 = scalar_lea.sflag [#allocation7], %s6838_s12  ;;  %p6839_p4 = scmp.ne.s32.totalorder %s6835_s20, 0 }
 0xda6   : > { %p5407_p3 = por %p5406_p2, %p5405_p10 }
 0xda7   : > { %p5400_p12 = pnand %p5399_p7, %p6839_p4 }
 0xda9   : > { %p5401_p1 = pneg %p5400_p12 }
 0xdab   : > { %p5408_p8 = pnand %p5407_p3, %p5401_p1 }
 0xdad   : > { %5411 = shalt.err (!%p5408_p8)
}
 0xdae   : > { %s5412_s8 = scalar_lea.hbm %s6657_s23, 32  ;;  %s5416_s28 = scalar_lea.hbm %s6837_s11, 64 }
 0xdaf   : > { %p5413_p11 = scmp.ne.s32.totalorder %s6657_s23, %s5412_s8  ;;  %p5417_p0 = scmp.lt.u32.totalorder %s6657_s23, %s6837_s11 }
 0xdb0   : > { %p5418_p5 = scmp.lt.u32.totalorder %s5416_s28, %s5412_s8  ;;  %p5420_p7 = scmp.lt.u32.totalorder %s5412_s8, %s6657_s23 }
 0xdb1   : > { %p5414_p13 = pnand %p5413_p11, %p6839_p4 }
 0xdb2   : > { %p5419_p6 = por %p5418_p5, %p5417_p0 }
 0xdb3   : > { %p5415_p9 = pneg %p5414_p13 }
 0xdb4   : > { %p5421_p12 = por %p5420_p7, %p5419_p6 }
 0xdb6   : > { %p5422_p1 = pnand %p5421_p12, %p5415_p9 }
 0xdb8   : > { %5425 = shalt.err (!%p5422_p1)
}
 0xdb9   : > { %4937 = dma.vmem_to_hbm [thread:$0]  (%p6839_p4), %s4246_s15, 32, %s6657_s23, %s4232_s14  }
 0xdba PF: > { %s6840_s30 = sld [smem:[#allocation27_spill]]  ;;  %s6841_s6 = sld [smem:[#allocation19_spill]] }
 0xdbb   : > { %s6842_s22 = sld [smem:[#allocation33_spill]] }
 0xdc0   : > { %p4957_p10 = scmp.ge.s32.totalorder %s6840_s30, 2  ;;  %s4257_s16 = sand.u32 1, %s6841_s6  }
 0xdc1   : > { %p6843_p2 = scmp.ne.s32.totalorder %s6842_s22, 0  ;;  %s4258_s17 = scalar_lea.sflag [#allocation7], %s4257_s16 }
 0xdc3   : > { %p4953_p3 = pnand %p4957_p10, %p6843_p2 }
 0xdc5   : > { %5485 = dma.done.wait (!%p4953_p3), %s4258_s17, 32  }
 0xdc6   : > { %5487 = vsyncadd (!%p4953_p3), %s4258_s17, 4294967264  ;;  %s47_s29 = sadd.s32 1, %s6840_s30   ;;  %s6844_s22 = sld [smem:[#allocation20_spill]] }
 0xdc7   : > { %p44_p8 = scmp.ge.s32.totalorder %s47_s29, 6   ;;  %s6845_s2 = sld [smem:[#allocation21_spill]] }
 0xdc8   : > { %s6846_s23 = sld [smem:[#allocation31_spill]]  ;;  %s6847_s24 = sld [smem:[#allocation22_spill]] }
 0xdc9   : > { %s6848_s13 = sld [smem:[#allocation23_spill]]  ;;  %s6849_s25 = sld [smem:[#allocation30_spill]] }
 0xdca   : > { %s6850_s3 = sld [smem:[#allocation25_spill]]  ;;  %s6851_s26 = sld [smem:[#allocation26_spill]] }
 0xdcb   : > { %s6852_s27 = sld [smem:[#allocation28_spill]]  ;;  %s6853_s28 = sld [smem:[#allocation29_spill]] }
 0xdcc   :  { %46 = sbr.rel (!%p44_p8) target bundleno = 40 (0x28), region = 211 }
 0xdd3   :  { %4263 = vsyncpa [#allocation6], 1 }
 0xdd4   :  { %4265 = vsyncpa [#allocation6 + $0x1], 1 }
 0xdd5   :  { %4266 = vsyncpa [#allocation9], 1 }
 0xdd6   :  { %4268 = vsyncpa [#allocation9 + $0x1], 1 }
 0xdd7   :  { %4269 = vsyncpa [#allocation12], 1 }
 0xdd8   :  { %4271 = vsyncpa [#allocation12 + $0x1], 1 }
 0xdd9   :  { %4272 = vsyncpa [#allocation7], 1 }
 0xdda   :  { %4274 = vsyncpa [#allocation7 + $0x1], 1 }

</bundles_post_ra>
